<compile_context>
chip_gen: v7x
topology: tpu7x:2x2x1
jax: 0.10.0
libtpu: 0.0.40
codegen_flags: <defaults>
</compile_context>

<pallas_src>
import jax
import jax.numpy as jnp
from jax.experimental import pallas as pl
from jax.experimental.pallas import tpu as pltpu


def _softmax_errors_kernel(x_ref, lab_ref, err_ref):
    x = x_ref[...].astype(jnp.float32)                       # (C, T)
    lab = lab_ref[...]                                       # (1, T) int32
    m = jnp.max(x, axis=0, keepdims=True)
    ex = jnp.exp(x - m)
    p = ex / jnp.sum(ex, axis=0, keepdims=True)               # softmax over C
    cls = jax.lax.broadcasted_iota(jnp.int32, x.shape, 0)
    fg = (lab == cls).astype(jnp.float32)                     # (C, T)
    valid = lab >= 0                                          # padded -> -1
    err_ref[...] = jnp.where(valid, jnp.abs(fg - p), 0.0)


def _lovasz_pairwise_kernel(err_row_ref, err_col_ref, lab_i_ref, lab_j_ref,
                            out_ref, acc_ref, enext_ref, gts_ref, loss_ref):
    c = pl.program_id(0)
    ti = pl.program_id(1)
    tj = pl.program_id(2)
    n_i = pl.num_programs(1)
    n_j = pl.num_programs(2)

    ti_size = lab_i_ref.shape[0]
    tj_size = lab_j_ref.shape[0]

    # ---- per-class init (runs once per class; class axis is 'parallel') ----
    @pl.when((ti == 0) & (tj == 0))
    def _():
        gts_ref[...] = jnp.zeros_like(gts_ref)
        loss_ref[...] = jnp.zeros_like(loss_ref)

    # ---- per-row-tile init --------------------------------------------------
    @pl.when(tj == 0)
    def _():
        acc_ref[...] = jnp.zeros_like(acc_ref)
        enext_ref[...] = jnp.zeros_like(enext_ref)

    lab_j = lab_j_ref[...]                                    # (TJ, 1) int32

    # Total foreground count for this class (sweep all j tiles during ti == 0;
    # complete exactly when the first finalize needs it).
    @pl.when(ti == 0)
    def _():
        fg_j = (lab_j == c).astype(jnp.float32)
        gts_ref[...] += jnp.sum(fg_j, axis=0, keepdims=True)  # (1, 1)

    # ---- pairwise rank tile -------------------------------------------------
    e_i = err_col_ref[0]                                      # (TI, 1) f32
    e_j = err_row_ref[0]                                      # (1, TJ) f32

    one = jnp.bfloat16(1.0)
    zero = jnp.bfloat16(0.0)
    fg_j_bf = jnp.where(lab_j == c, one, zero)                # (TJ, 1) bf16
    col2 = jax.lax.broadcasted_iota(jnp.int32, (tj_size, 2), 1)
    # One bf16 MXU matmul gives both lane reductions at once:
    #   col 0 -> number of elements sorted before i (rank - 1)
    #   col 1 -> cumulative foreground among those elements
    rhs = jnp.where(col2 == 0, one, fg_j_bf)                  # (TJ, 2) bf16

    def accumulate(before_bf, cand):
        acc_ref[...] += jnp.dot(before_bf, rhs,
                                preferred_element_type=jnp.float32)  # (TI, 2)
        # Error of the next element in sorted order: running max over the
        # "after" set.  Errors >= 0 and the accumulator starts at 0, so this
        # is already the clamped value.
        enext_ref[...] = jnp.maximum(enext_ref[...],
                                     jnp.max(cand, axis=1, keepdims=True))

    # Diagonal tiles need the full (error, index) stable tie-break; off-
    # diagonal tiles have a fixed index ordering so ties reduce to >= / >.
    @pl.when(ti == tj)
    def _():
        g_i = jax.lax.broadcasted_iota(jnp.int32, (ti_size, 1), 0)
        g_j = jax.lax.broadcasted_iota(jnp.int32, (1, tj_size), 1)
        before = (e_j > e_i) | ((e_j == e_i) & (g_j < g_i))
        not_after = before | (g_j == g_i)
        accumulate(jnp.where(before, one, zero),
                   jnp.where(not_after, 0.0, e_j))

    @pl.when(tj < ti)
    def _():
        before = e_j >= e_i            # ties: j (smaller index) sorts before i
        accumulate(jnp.where(before, one, zero),
                   jnp.where(before, 0.0, e_j))

    @pl.when(tj > ti)
    def _():
        before = e_j > e_i             # ties: j (larger index) sorts after i
        accumulate(jnp.where(before, one, zero),
                   jnp.where(before, 0.0, e_j))

    # ---- finalize this row tile: Jaccard + Abel summation -------------------
    @pl.when(tj == n_j - 1)
    def _():
        lab_i = lab_i_ref[...]                                # (TI, 1) int32
        fg_i = (lab_i == c).astype(jnp.float32)
        valid_i = (lab_i >= 0).astype(jnp.float32)            # mask padding
        cnt = acc_ref[:, 0:1] + 1.0                           # 1-indexed rank
        cumfg = acc_ref[:, 1:2] + fg_i
        gts = gts_ref[...]                                    # (1, 1)
        inter = gts - cumfg
        union = gts + cnt - cumfg                             # always >= 1
        jac = 1.0 - inter / union
        # dot(errors_sorted, lovasz_grad) == sum_i jac_i * (e_i - e_next_i)
        loss_tile = jnp.sum(valid_i * jac * (e_i - enext_ref[...]),
                            axis=0, keepdims=True)            # (1, 1)
        loss_ref[...] += loss_tile

    # ---- per-class output: lane 0 = loss (masked by present), lane 1 = present
    @pl.when((ti == n_i - 1) & (tj == n_j - 1))
    def _():
        present = (gts_ref[...] > 0.0).astype(jnp.float32)    # (1, 1)
        loss_c = loss_ref[...] * present                      # (1, 1)
        lane = jax.lax.broadcasted_iota(jnp.int32, (1, 1, 128), 2)
        out_ref[...] = jnp.where(lane == 0, loss_c,
                                 jnp.where(lane == 1, present, 0.0))


def lovasz_softmax_loss(output, target, *, tile=1024):
    """output: (B, C, H, W) float logits; target: (B, H, W) int labels."""
    B, C, H, W = output.shape
    N = B * H * W
    tile = int(tile)
    assert tile % 128 == 0, "tile must be a multiple of 128"

    # Stage-2 pixel padding (smallest multiple of the stage-2 tile >= N).
    npad2 = ((N + tile - 1) // tile) * tile
    # Stage-1 pixel tile: a multiple of the stage-2 tile (so both stages can
    # address the same error array), sized so the (C, tile1) f32 block is a
    # couple of MiB -> stage 1 runs near the HBM roofline instead of being
    # dominated by per-grid-step overhead.
    mult = max(1, min(64, (2 << 20) // max(1, C * tile * 4)))
    tile1 = tile * mult
    npad1 = ((N + tile1 - 1) // tile1) * tile1   # >= npad2, multiple of tile

    # Single layout pass: logits lane-dense as (C, N), native dtype (upcast
    # happens inside the kernel after the DMA).
    x_cn = jnp.transpose(output, (1, 0, 2, 3)).reshape(C, N)
    lab = target.reshape(1, N).astype(jnp.int32)
    if npad1 != N:
        x_cn = jnp.pad(x_cn, ((0, 0), (0, npad1 - N)))
        lab = jnp.pad(lab, ((0, 0), (0, npad1 - N)), constant_values=-1)

    # Generation-aware VMEM limit (v7x has 64 MiB total; v5e/v6e have 128 MiB).
    try:
        vmem_cap = int(getattr(pltpu.get_tpu_info(), "vmem_capacity_bytes",
                               64 << 20))
    except Exception:
        vmem_cap = 64 << 20
    vmem_limit = int(min(vmem_cap * 3 // 4, 100 << 20))

    # ---- Stage 1: softmax + per-class errors, (C, npad1) f32 ---------------
    errors = pl.pallas_call(
        _softmax_errors_kernel,
        out_shape=jax.ShapeDtypeStruct((C, npad1), jnp.float32),
        grid_spec=pltpu.PrefetchScalarGridSpec(
            num_scalar_prefetch=0,
            grid=(npad1 // tile1,),
            in_specs=[pl.BlockSpec((C, tile1), lambda j: (0, j)),
                      pl.BlockSpec((1, tile1), lambda j: (0, j))],
            out_specs=pl.BlockSpec((C, tile1), lambda j: (0, j))),
        compiler_params=pltpu.CompilerParams(
            dimension_semantics=("parallel",),
            vmem_limit_bytes=vmem_limit),
    )(x_cn, lab)

    # Free (bitcast) views: the BlockSpec DMAs deliver row-oriented (1, TJ) and
    # column-oriented (TI, 1) tiles of the *same* HBM bytes -> no in-kernel
    # transposes and exactly consistent tie-breaks.  Stage 2 only touches the
    # first npad2 (<= npad1) pixel columns.
    err_row = errors.reshape(C, 1, npad1)
    err_col = errors.reshape(C, npad1, 1)
    lab_col = lab.reshape(npad1, 1)

    nt = npad2 // tile

    # ---- Stage 2: tiled pairwise-rank Lovasz loss, per-class outputs --------
    per_class = pl.pallas_call(
        _lovasz_pairwise_kernel,
        out_shape=jax.ShapeDtypeStruct((C, 1, 128), jnp.float32),
        grid_spec=pltpu.PrefetchScalarGridSpec(
            num_scalar_prefetch=0,
            grid=(C, nt, nt),
            in_specs=[
                pl.BlockSpec((1, 1, tile), lambda c, i, j: (c, 0, j)),  # e row
                pl.BlockSpec((1, tile, 1), lambda c, i, j: (c, i, 0)),  # e col
                pl.BlockSpec((tile, 1), lambda c, i, j: (i, 0)),        # lab i
                pl.BlockSpec((tile, 1), lambda c, i, j: (j, 0)),        # lab j
            ],
            out_specs=pl.BlockSpec((1, 1, 128), lambda c, i, j: (c, 0, 0)),
            scratch_shapes=[
                pltpu.VMEM((tile, 2), jnp.float32),   # [rank, cum-fg] partials
                pltpu.VMEM((tile, 1), jnp.float32),   # running next-error max
                pltpu.VMEM((1, 1), jnp.float32),      # per-class fg total (gts)
                pltpu.VMEM((1, 1), jnp.float32),      # per-class loss partial
            ]),
        compiler_params=pltpu.CompilerParams(
            # No cross-class carry anymore -> class axis is embarrassingly
            # parallel (splits across TCs on megacore parts).
            dimension_semantics=("parallel", "arbitrary", "arbitrary"),
            vmem_limit_bytes=vmem_limit),
    )(err_row, err_col, lab_col, lab_col)

    # classes='present' average (tiny epilogue in plain jnp).
    loss_c = per_class[:, 0, 0]
    present_c = per_class[:, 0, 1]
    total = jnp.sum(loss_c)
    count = jnp.sum(present_c)
    return jnp.where(count > 0.0, total / jnp.maximum(count, 1.0),
                     jnp.float32(0.0))


def _reference_lovasz(logits, target):
    """Pure-JAX reference (explicit sort), matching lovasz_softmax semantics."""
    B, C, H, W = logits.shape
    probs = jax.nn.softmax(logits.astype(jnp.float32), axis=1)
    p = jnp.transpose(probs, (0, 2, 3, 1)).reshape(-1, C)
    lab = target.reshape(-1)
    total = jnp.float32(0.0)
    count = jnp.float32(0.0)
    for c in range(C):
        fg = (lab == c).astype(jnp.float32)
        errors = jnp.abs(fg - p[:, c])
        order = jnp.argsort(-errors)
        e_s = errors[order]
        fg_s = fg[order]
        gts = jnp.sum(fg_s)
        inter = gts - jnp.cumsum(fg_s)
        union = gts + jnp.cumsum(1.0 - fg_s)
        jac = 1.0 - inter / union
        grad = jnp.concatenate([jac[:1], jac[1:] - jac[:-1]])
        loss_c = jnp.dot(e_s, grad)
        present = (gts > 0).astype(jnp.float32)
        total = total + present * loss_c
        count = count + present
    return jnp.where(count > 0, total / jnp.maximum(count, 1.0), 0.0)


if __name__ == "__main__":
    key = jax.random.PRNGKey(0)
    k1, k2, k3, k4, k5, k6 = jax.random.split(key, 6)

    # Main check: module-sized inputs; tile=128 gives a (C, 4, 4) stage-2 grid
    # so the cross-tile accumulators and all three tile branches are exercised.
    B, C, H, W = 2, 4, 16, 16
    logits = jax.random.normal(k1, (B, C, H, W), dtype=jnp.float32)
    target = jax.random.randint(k2, (B, H, W), 0, C, dtype=jnp.int32)
    loss = jax.block_until_ready(lovasz_softmax_loss(logits, target, tile=128))
    ref = jax.block_until_ready(_reference_lovasz(logits, target))
    assert jnp.isfinite(loss), loss
    assert jnp.allclose(loss, ref, atol=1e-3, rtol=1e-3), (loss, ref)

    # Secondary check: ragged pixel count exercises the padding/mask path.
    B2, C2, H2, W2 = 1, 3, 7, 9
    logits2 = jax.random.normal(k3, (B2, C2, H2, W2), dtype=jnp.float32)
    target2 = jax.random.randint(k4, (B2, H2, W2), 0, C2, dtype=jnp.int32)
    loss2 = jax.block_until_ready(lovasz_softmax_loss(logits2, target2, tile=128))
    ref2 = jax.block_until_ready(_reference_lovasz(logits2, target2))
    assert jnp.isfinite(loss2), loss2
    assert jnp.allclose(loss2, ref2, atol=1e-3, rtol=1e-3), (loss2, ref2)

    # Third check: default (production) tiling path, multi-tile stage-2 grid.
    B3, C3, H3, W3 = 1, 3, 40, 40
    logits3 = jax.random.normal(k5, (B3, C3, H3, W3), dtype=jnp.float32)
    target3 = jax.random.randint(k6, (B3, H3, W3), 0, C3, dtype=jnp.int32)
    loss3 = jax.block_until_ready(lovasz_softmax_loss(logits3, target3))
    ref3 = jax.block_until_ready(_reference_lovasz(logits3, target3))
    assert jnp.isfinite(loss3), loss3
    assert jnp.allclose(loss3, ref3, atol=1e-3, rtol=1e-3), (loss3, ref3)

    print("KERNEL_OK")
</pallas_src>

<mosaic_0001>
module attributes {stable_mosaic.version = 11 : i64} {
  func.func @_softmax_errors_kernel(%arg0: i32, %arg1: memref<4x8192xf32, #tpu.memory_space<vmem>>, %arg2: memref<1x8192xi32, #tpu.memory_space<vmem>>, %arg3: memref<4x8192xf32, #tpu.memory_space<vmem>>) attributes {dimension_semantics = [#tpu.dimension_semantics<parallel>], iteration_bounds = array<i64: 1>, scalar_prefetch = 0 : i64, scratch_operands = 0 : i64, tpu.core_type = #tpu.core_type<tc>, window_params = [{transform_indices = @transform_0, window_bounds = array<i64: 4, 8192>}, {transform_indices = @transform_1, window_bounds = array<i64: 1, 8192>}, {transform_indices = @transform_2, window_bounds = array<i64: 4, 8192>}]} {
    %c0 = arith.constant 0 : index
    %c0_0 = arith.constant 0 : index
    %0 = vector.load %arg1[%c0, %c0_0] : memref<4x8192xf32, #tpu.memory_space<vmem>>, vector<4x8192xf32>
    %c0_1 = arith.constant 0 : index
    %c0_2 = arith.constant 0 : index
    %1 = vector.load %arg2[%c0_1, %c0_2] : memref<1x8192xi32, #tpu.memory_space<vmem>>, vector<1x8192xi32>
    %cst = arith.constant dense<0xFF800000> : vector<8192xf32>
    %2 = vector.multi_reduction <maximumf>, %0, %cst [0] : vector<4x8192xf32> to vector<8192xf32>
    %3 = vector.shape_cast %2 : vector<8192xf32> to vector<1x8192xf32>
    %4 = vector.broadcast %3 : vector<1x8192xf32> to vector<4x8192xf32>
    %5 = arith.subf %0, %4 : vector<4x8192xf32>
    %6 = math.exp %5 : vector<4x8192xf32>
    %cst_3 = arith.constant dense<0.000000e+00> : vector<8192xf32>
    %7 = vector.multi_reduction <add>, %6, %cst_3 [0] : vector<4x8192xf32> to vector<8192xf32>
    %8 = vector.shape_cast %7 : vector<8192xf32> to vector<1x8192xf32>
    %9 = vector.broadcast %8 : vector<1x8192xf32> to vector<4x8192xf32>
    %10 = arith.divf %6, %9 : vector<4x8192xf32>
    %11 = tpu.iota {dimensions = array<i32: 0>} : vector<4x8192xi32>
    %12 = vector.broadcast %1 : vector<1x8192xi32> to vector<4x8192xi32>
    %13 = arith.cmpi eq, %12, %11 : vector<4x8192xi32>
    %14 = arith.extui %13 : vector<4x8192xi1> to vector<4x8192xi32>
    %15 = arith.sitofp %14 : vector<4x8192xi32> to vector<4x8192xf32>
    %c0_i32 = arith.constant 0 : i32
    %16 = vector.broadcast %c0_i32 : i32 to vector<1x8192xi32>
    %17 = arith.cmpi sge, %1, %16 : vector<1x8192xi32>
    %18 = arith.subf %15, %10 : vector<4x8192xf32>
    %19 = math.absf %18 : vector<4x8192xf32>
    %cst_4 = arith.constant 0.000000e+00 : f32
    %20 = vector.shape_cast %17 : vector<1x8192xi1> to vector<1x8192xi1>
    %21 = vector.broadcast %20 : vector<1x8192xi1> to vector<4x8192xi1>
    %22 = vector.broadcast %cst_4 : f32 to vector<4x8192xf32>
    %23 = arith.select %21, %19, %22 : vector<4x8192xi1>, vector<4x8192xf32>
    %c0_5 = arith.constant 0 : index
    %c0_6 = arith.constant 0 : index
    %24 = vector.load %arg3[%c0_5, %c0_6] : memref<4x8192xf32, #tpu.memory_space<vmem>>, vector<4x8192xf32>
    tpu.vector_store %arg3[%c0_5, %c0_6], %23 {strides = array<i32>} : memref<4x8192xf32, #tpu.memory_space<vmem>>, vector<4x8192xf32>,
    return
  }
  func.func @transform_0(%arg0: i32) -> (i32, i32) {
    %c0_i32 = arith.constant 0 : i32
    %c0_i32_0 = arith.constant 0 : i32
    return %c0_i32, %arg0 : i32, i32
  }
  func.func @transform_1(%arg0: i32) -> (i32, i32) {
    %c0_i32 = arith.constant 0 : i32
    %c0_i32_0 = arith.constant 0 : i32
    return %c0_i32, %arg0 : i32, i32
  }
  func.func @transform_2(%arg0: i32) -> (i32, i32) {
    %c0_i32 = arith.constant 0 : i32
    %c0_i32_0 = arith.constant 0 : i32
    return %c0_i32, %arg0 : i32, i32
  }
}

</mosaic_0001>

<bundles_post_ra>
// kernel: tpu_custom_call.1
= control target key start
LH: loop header
LB: loop body
LE: loop exit
PB: predicated region body
PF: predicated region fallthrough
CT: control target
= control target key end

     0   :  { %7 = vsyncpa [#allocation3], 0  ;;  %s4826_s0 = inlined_call_operand.hbm [shape: f32[4,8192], index: 0, kind: input, shape index: {}]   ;;  %s4827_s1 = inlined_call_operand.hbm [shape: s32[1,8192], index: 1, kind: input, shape index: {}]   ;;  %s4828_s2 = inlined_call_operand.hbm [shape: f32[4,8192], index: 2, kind: output, shape index: {}]  }
   0x1   :  { %8 = vsyncpa [#allocation6], 0 }
   0x2   :  { %9 = vsyncpa [#allocation4], 0  ;;  %s3132_s9 = smov [#allocation2]   ;;  %s3133_s11 = smov [#allocation5]  }
   0x3   :  { %s16_s10 = sshll.u32 %s3132_s9, 4  ;;  %s26_s12 = sshll.u32 %s3133_s11, 4  ;;  %s17_s10 = int_to_ptr.vmem [resolvable:$true] %s16_s10  ;;  %s27_s12 = int_to_ptr.vmem [resolvable:$true] %s26_s12 }
   0x4   :  { %s3060_s15 = scalar_lea.hbm %s4826_s0, 4096 }
   0x5   :  { %p3061_p0 = scmp.ne.s32.totalorder %s4826_s0, %s3060_s15  ;;  %p3064_p1 = scmp.lt.u32.totalorder %s3060_s15, %s4826_s0 }
   0x7   :  { %p3066_p2 = pnand %p3064_p1, %p3061_p0 }
   0x9   :  { %3069 = shalt.err (!%p3066_p2)
}
   0xa   :  { %s3070_s20 = scalar_lea.vmem %s17_s10, 4096  ;;  %p3075_p4 = scmp.lt.s32.totalorder %s17_s10, %s17_s10 }
   0xb   :  { %p3071_p3 = scmp.ne.s32.totalorder %s17_s10, %s3070_s20  ;;  %p3076_p5 = scmp.lt.s32.totalorder %s3070_s20, %s3070_s20 }
   0xd   :  { %p3077_p6 = por %p3076_p5, %p3075_p4 }
   0xf   :  { %p3078_p7 = pnand %p3077_p6, %p3071_p3 }
  0x11   :  { %3081 = shalt.err (!%p3078_p7)
}
  0x12   :  { %19 = dma.hbm_to_vmem [thread:$0]  %s4826_s0, 4096, %s17_s10, [#allocation3]  }
  0x13   :  { %s3082_s25 = scalar_lea.hbm %s4827_s1, 1024 }
  0x14   :  { %p3083_p8 = scmp.ne.s32.totalorder %s4827_s1, %s3082_s25  ;;  %p3086_p9 = scmp.lt.u32.totalorder %s3082_s25, %s4827_s1 }
  0x16   :  { %p3088_p10 = pnand %p3086_p9, %p3083_p8 }
  0x18   :  { %3091 = shalt.err (!%p3088_p10)
}
  0x19   :  { %s3092_s30 = scalar_lea.vmem %s27_s12, 1024  ;;  %p3097_p12 = scmp.lt.s32.totalorder %s27_s12, %s27_s12 }
  0x1a   :  { %p3093_p11 = scmp.ne.s32.totalorder %s27_s12, %s3092_s30  ;;  %p3098_p13 = scmp.lt.s32.totalorder %s3092_s30, %s3092_s30 }
  0x1c   :  { %p3099_p0 = por %p3098_p13, %p3097_p12 }
  0x1e   :  { %p3100_p1 = pnand %p3099_p0, %p3093_p11 }
  0x20   :  { %3103 = shalt.err (!%p3100_p1)
}
  0x21   :  { %29 = dma.hbm_to_vmem [thread:$0]  %s4827_s1, 1024, %s27_s12, [#allocation6]  }
  0x22   :  { %3126 = dma.done.wait [#allocation3], 4096  }
  0x23   :  { %3127 = vsyncadd [#allocation3], 4294963200 }
  0x24   :  { %3128 = dma.done.wait [#allocation6], 1024  }
  0x25   :  { %3129 = vsyncadd [#allocation6], 4294966272  ;;  %vm172_vm0 = vcmask 1043456   ;;  %v36_v0 = vld [vmem:[#allocation2] sm:$0xff]  ;;  %v37_v1 = vld [vmem:[#allocation2 + $0x8] sm:$0xff]  ;;  %v1581_v15 = vlaneseq  ;;  %s3136_s1 = smov [#allocation7]  }
  0x26   :  { %v108_v2 = vcombine.high %v36_v0, %v36_v0  ;;  %v173_v3 = vsel %vm172_vm0, %v36_v0, -inf  ;;  %v109_v5 = vcombine.high %v37_v1, %v37_v1  ;;  %v187_v6 = vsel %vm172_vm0, %v37_v1, -inf  ;;  %v3180_v20 = vld [vmem:[#allocation2 + $0x10] sm:$0xff]  ;;  %v3195_v42 = vld [vmem:[#allocation5] sm:$0xff]  ;;  %v3197_v46 = vld [vmem:[#allocation2 + $0x18] sm:$0xff]  ;;  %s2821_s4 = sshll.u32 %s3136_s1, 4  ;;  %s2822_s4 = int_to_ptr.vmem [resolvable:$true] %s2821_s4 }
  0x27   :  { %v174_v4 = vrot.slane %v173_v3, 4  ;;  %v188_v10 = vrot.slane %v187_v6, 4  ;;  %v3182_v25 = vshrl.u32 %v1581_v15, 7  ;;  %v110_v27 = vcombine.high %v3180_v20, %v3180_v20  ;;  %s3104_s5 = scalar_lea.vmem %s2822_s4, 4096  ;;  %p3109_p3 = scmp.lt.s32.totalorder %s2822_s4, %s2822_s4 }
  0x28   :  { %v180_v7 = vsel %vm172_vm0, %v108_v2, -inf  ;;  %v194_v11 = vsel %vm172_vm0, %v109_v5, -inf  ;;  %v201_v31 = vsel %vm172_vm0, %v3180_v20, -inf  ;;  %v111_v58 = vcombine.high %v3197_v46, %v3197_v46  ;;  %p3105_p2 = scmp.ne.s32.totalorder %s2822_s4, %s3104_s5  ;;  %p3110_p4 = scmp.lt.s32.totalorder %s3104_s5, %s3104_s5 }
  0x29   :  { %v175_v8 = vmax.f32 %v173_v3, %v174_v4  ;;  %v181_v9 = vrot.slane %v180_v7, 4  ;;  %v195_v14 = vrot.slane %v194_v11, 4  ;;  %v189_v16 = vmax.f32 %v187_v6, %v188_v10 }
  0x2a   :  { %v202_v33 = vrot.slane %v201_v31, 4  ;;  %v208_v34 = vsel %vm172_vm0, %v110_v27, -inf  ;;  %v3190_v38 = vsub.s32 0, %v3182_v25  ;;  %v3193_v39 = vsub.s32 1, %v3182_v25  ;;  %p3111_p5 = por %p3110_p4, %p3109_p3 }
  0x2b   :  { %v176_v12 = vrot.slane %v175_v8, 2  ;;  %v182_v13 = vmax.f32 %v180_v7, %v181_v9  ;;  %v196_v19 = vmax.f32 %v194_v11, %v195_v14  ;;  %v190_v21 = vrot.slane %v189_v16, 2  ;;  %v3226_v9 = vld [vmem:[#allocation2 + $0x20] sm:$0xff] }
  0x2c   :  { %v209_v37 = vrot.slane %v208_v34, 4  ;;  %v203_v41 = vmax.f32 %v201_v31, %v202_v33  ;;  %v3200_v47 = vsub.s32 2, %v3182_v25  ;;  %v3203_v48 = vsub.s32 3, %v3182_v25  ;;  %p3112_p6 = pnand %p3111_p5, %p3105_p2 }
  0x2d   :  { %v177_v17 = vmax.f32 %v175_v8, %v176_v12  ;;  %v183_v18 = vrot.slane %v182_v13, 2  ;;  %v197_v24 = vrot.slane %v196_v19, 2  ;;  %v191_v26 = vmax.f32 %v189_v16, %v190_v21 }
  0x2e   :  { %v210_v45 = vmax.f32 %v208_v34, %v209_v37  ;;  %v204_v49 = vrot.slane %v203_v41, 2  ;;  %v3206_v50 = vsub.s32 4, %v3182_v25  ;;  %v3209_v54 = vsub.s32 5, %v3182_v25 }
  0x2f   :  { %v178_v22 = vrot.slane %v177_v17, 1  ;;  %v184_v23 = vmax.f32 %v182_v13, %v183_v18  ;;  %v198_v30 = vmax.f32 %v196_v19, %v197_v24  ;;  %v192_v32 = vrot.slane %v191_v26, 1 }
  0x30   :  { %v211_v53 = vrot.slane %v210_v45, 2  ;;  %v1586_v55 = vrot.slane %v3195_v42, %v3190_v38  ;;  %v1590_v56 = vrot.slane %v3195_v42, %v3193_v39  ;;  %v205_v57 = vmax.f32 %v203_v41, %v204_v49 }
  0x31   :  { %v179_v28 = vmax.f32 %v177_v17, %v178_v22  ;;  %v185_v29 = vrot.slane %v184_v23, 1  ;;  %v199_v36 = vrot.slane %v198_v30, 1  ;;  %v193_v40 = vmax.f32 %v191_v26, %v192_v32 }
  0x32   :  { %v212_v61 = vmax.f32 %v210_v45, %v211_v53  ;;  %v215_v62 = vsel %vm172_vm0, %v3197_v46, -inf  ;;  %vm2031_vm1 = vcmp.ge.s32.totalorder %v3195_v42, 0  ;;  %v206_v63 = vrot.slane %v205_v57, 1 }
  0x33   :  { %v186_v35 = vmax.f32 %v184_v23, %v185_v29  ;;  %v200_v44 = vmax.f32 %v198_v30, %v199_v36  ;;  %v222_v2 = vsel %vm172_vm0, %v111_v58, -inf  ;;  %v1594_v6 = vrot.slane %v3195_v42, %v3200_v47 }
  0x34   :  { %v213_v4 = vrot.slane %v212_v61, 1  ;;  %v223_v5 = vrot.slane %v222_v2, 4  ;;  %v207_v7 = vmax.f32 %v205_v57, %v206_v63  ;;  %vm1839_vm2 = vcmp.eq.s32.totalorder %v1586_v55, %v3182_v25 }
  0x35   :  { %v685_v43 = vcombine.low %v179_v28, %v186_v35  ;;  %v686_v52 = vcombine.low %v193_v40, %v200_v44  ;;  %vm3230_vm3 = vcmp.eq.s32.totalorder %v1590_v56, %v3182_v25  ;;  %v3134_v13 = vmov 0  }
  0x36   :  { %v214_v10 = vmax.f32 %v212_v61, %v213_v4  ;;  %v224_v11 = vmax.f32 %v222_v2, %v223_v5  ;;  %v3237_v14 = vsel %vm2031_vm1, 1, %v3134_v13  ;;  %v3240_v16 = vsub.s32 7, %v3182_v25 }
  0x37   :  { %v749_v51 = vsub.f32 %v36_v0, %v685_v43  ;;  %v750_v60 = vsub.f32 %v37_v1, %v686_v52  ;;  %v216_v0 = vrot.slane %v215_v62, 4  ;;  %v3224_v1 = vsub.s32 6, %v3182_v25 }
  0x38   :  { %v1598_v17 = vrot.slane %v3195_v42, %v3203_v48  ;;  %v687_v18 = vcombine.low %v207_v7, %v214_v10  ;;  %v225_v19 = vrot.slane %v224_v11, 2  ;;  %v112_v21 = vcombine.high %v3226_v9, %v3226_v9 }
  0x39   :  { %v781_v59 = vmul.f32 1.442695, %v749_v51  ;;  %v783_v3 = vmul.f32 1.442695, %v750_v60  ;;  %v217_v8 = vmax.f32 %v215_v62, %v216_v0  ;;  %v3135_v22 = vmov 0.0  }
  0x3a   :  { %v3247_v23 = vsel %vm1839_vm2, 1.0, %v3135_v22  ;;  %vm3250_vm4 = vcmp.eq.s32.totalorder %v1594_v6, %v3182_v25  ;;  %v229_v27 = vsel %vm172_vm0, %v3226_v9, -inf  ;;  %v751_v28 = vsub.f32 %v3180_v20, %v687_v18 }
  0x3b   :  { %2932 = vpow2.f32 %v781_v59  ;;  %v218_v15 = vrot.slane %v217_v8, 2  ;;  %v226_v29 = vmax.f32 %v224_v11, %v225_v19  ;;  %v230_v30 = vrot.slane %v229_v27, 4 }
  0x3c   :  { %2934 = vpow2.f32 %v783_v3  ;;  %v236_v31 = vsel %vm172_vm0, %v112_v21, -inf  ;;  %v3261_v32 = vsel %vm3230_vm3, 1.0, %v3135_v22  ;;  %v2274_v33 = vrot.slane %v3237_v14, %v3190_v38 }
  0x3d   :  { %v219_v26 = vmax.f32 %v217_v8, %v218_v15  ;;  %v237_v35 = vrot.slane %v236_v31, 4  ;;  %vm1842_vm5 = vcmp.eq.s32.totalorder %v1598_v17, %v3182_v25  ;;  %v785_v36 = vmul.f32 1.442695, %v751_v28 }
  0x3e   :  { %v227_v37 = vrot.slane %v226_v29, 1  ;;  %v231_v40 = vmax.f32 %v229_v27, %v230_v30  ;;  %v2278_v20 = vrot.slane %v3237_v14, %v3193_v39  ;;  %v3271_v41 = vsel %vm3250_vm4, 1.0, %v3135_v22 }
  0x3f   :  { %v220_v34 = vrot.slane %v219_v26, 1  ;;  %v238_v44 = vmax.f32 %v236_v31, %v237_v35  ;;  %v2282_v49 = vrot.slane %v3237_v14, %v3200_v47  ;;  %2936 = vpow2.f32 %v785_v36  ;;  %v3299_v31 = vld [vmem:[#allocation2 + $0x28] sm:$0xff] }
  0x40   :  { %v228_v51 = vmax.f32 %v226_v29, %v227_v37  ;;  %v232_v52 = vrot.slane %v231_v40, 2  ;;  %v3282_v56 = vsel %vm1842_vm5, 1.0, %v3135_v22  ;;  %v2286_v60 = vrot.slane %v3237_v14, %v3203_v48 }
  0x41   :  { %v221_v43 = vmax.f32 %v219_v26, %v220_v34  ;;  %v239_v57 = vrot.slane %v238_v44, 2  ;;  %v1602_v10 = vrot.slane %v3195_v42, %v3206_v50  ;;  %v1606_v21 = vrot.slane %v3195_v42, %v3209_v54 }
  0x42   :  { %v233_v62 = vmax.f32 %v231_v40, %v232_v52  ;;  %v1610_v35 = vrot.slane %v3195_v42, %v3224_v1  ;;  %vm3357_vm9 = vcmp.eq.s32.totalorder %v2274_v33, 1  ;;  %vm3377_vm10 = vcmp.eq.s32.totalorder %v2278_v20, 1 }
  0x43   :  { %v688_v61 = vcombine.low %v221_v43, %v228_v51  ;;  %v240_v3 = vmax.f32 %v238_v44, %v239_v57  ;;  %vm3302_vm6 = vcmp.eq.s32.totalorder %v1602_v10, %v3182_v25  ;;  %v113_v57 = vcombine.high %v3299_v31, %v3299_v31 }
  0x44   :  { %v234_v11 = vrot.slane %v233_v62, 1  ;;  %vm3322_vm7 = vcmp.eq.s32.totalorder %v1606_v21, %v3182_v25  ;;  %vm3336_vm8 = vcmp.eq.s32.totalorder %v1610_v35, %v3182_v25  ;;  %vm3384_vm11 = vcmp.eq.s32.totalorder %v2282_v49, 1 }
  0x45   :  { %v3273_v45 = vpop.eup %2932  ;;  %v752_v7 = vsub.f32 %v3197_v46, %v688_v61  ;;  %v241_v12 = vrot.slane %v240_v3, 1  ;;  %v3347_v35 = vsel %vm3322_vm7, 1.0, %v3135_v22  ;;  %vm3397_vm12 = vcmp.eq.s32.totalorder %v2286_v60, 1 }
  0x46   :  { %v877_v53 = vcombine.high %v3273_v45, %v3273_v45  ;;  %v941_v55 = vsel %vm172_vm0, %v3273_v45, 0.0  ;;  %v3284_v58 = vpop.eup %2934  ;;  %v235_v26 = vmax.f32 %v233_v62, %v234_v11  ;;  %v250_v11 = vsel %vm172_vm0, %v113_v57, -inf }
  0x47   :  { %v942_v59 = vrot.slane %v941_v55, 4  ;;  %v878_v0 = vcombine.high %v3284_v58, %v3284_v58  ;;  %v955_v2 = vsel %vm172_vm0, %v3284_v58, 0.0  ;;  %v787_v24 = vmul.f32 1.442695, %v752_v7 }
  0x48   :  { %v948_v63 = vsel %vm172_vm0, %v877_v53, 0.0  ;;  %v956_v6 = vrot.slane %v955_v2, 4  ;;  %v242_v27 = vmax.f32 %v240_v3, %v241_v12 }
  0x49   :  { %v943_v4 = vadd.f32 %v942_v59, %v941_v55  ;;  %v949_v5 = vrot.slane %v948_v63, 4  ;;  %v962_v8 = vsel %vm172_vm0, %v878_v0, 0.0  ;;  %2938 = vpow2.f32 %v787_v24  ;;  %v3308_v37 = vpop.eup %2936 }
  0x4a   :  { %v957_v18 = vadd.f32 %v956_v6, %v955_v2  ;;  %v963_v19 = vrot.slane %v962_v8, 4  ;;  %v689_v36 = vcombine.low %v235_v26, %v242_v27  ;;  %v879_v52 = vcombine.high %v3308_v37, %v3308_v37 }
  0x4b   :  { %v944_v15 = vrot.slane %v943_v4, 2  ;;  %v950_v17 = vadd.f32 %v949_v5, %v948_v63  ;;  %v969_v53 = vsel %vm172_vm0, %v3308_v37, 0.0  ;;  %v2290_v26 = vrot.slane %v3237_v14, %v3206_v50 }
  0x4c   :  { %v958_v46 = vrot.slane %v957_v18, 2  ;;  %v964_v30 = vadd.f32 %v963_v19, %v962_v8  ;;  %v753_v55 = vsub.f32 %v3226_v9, %v689_v36  ;;  %v970_v0 = vrot.slane %v969_v53, 4 }
  0x4d   :  { %v945_v28 = vadd.f32 %v944_v15, %v943_v4  ;;  %v951_v29 = vrot.slane %v950_v17, 2  ;;  %v976_v2 = vsel %vm172_vm0, %v879_v52, 0.0  ;;  %v243_v4 = vsel %vm172_vm0, %v3299_v31, -inf }
  0x4e   :  { %v959_v44 = vadd.f32 %v958_v46, %v957_v18  ;;  %v965_v51 = vrot.slane %v964_v30, 2  ;;  %v789_v3 = vmul.f32 1.442695, %v753_v55  ;;  %v977_v8 = vrot.slane %v976_v2, 4 }
  0x4f   :  { %v946_v40 = vrot.slane %v945_v28, 1  ;;  %v952_v43 = vadd.f32 %v951_v29, %v950_v17  ;;  %v971_v10 = vadd.f32 %v970_v0, %v969_v53  ;;  %v244_v9 = vrot.slane %v243_v4, 4 }
  0x50   :  { %v960_v62 = vrot.slane %v959_v44, 1  ;;  %v966_v63 = vadd.f32 %v965_v51, %v964_v30  ;;  %2940 = vpow2.f32 %v789_v3  ;;  %v978_v17 = vadd.f32 %v977_v8, %v976_v2 }
  0x51   :  { %v947_v59 = vadd.f32 %v946_v40, %v945_v28  ;;  %v953_v61 = vrot.slane %v952_v43, 1  ;;  %v251_v18 = vrot.slane %v250_v11, 4  ;;  %v972_v19 = vrot.slane %v971_v10, 2 }
  0x52   :  { %v961_v6 = vadd.f32 %v960_v62, %v959_v44  ;;  %v967_v7 = vrot.slane %v966_v63, 1  ;;  %v245_v27 = vmax.f32 %v243_v4, %v244_v9  ;;  %v979_v29 = vrot.slane %v978_v17, 2 }
  0x53   :  { %v954_v5 = vadd.f32 %v953_v61, %v952_v43  ;;  %v252_v46 = vmax.f32 %v250_v11, %v251_v18  ;;  %v3328_v30 = vpop.eup %2938  ;;  %v973_v36 = vadd.f32 %v972_v19, %v971_v10  ;;  %v3333_v40 = vsel %vm3302_vm6, 1.0, %v3135_v22  ;;  %v3368_v10 = vld [vmem:[#allocation5 + $0x8] sm:$0xff] }
  0x54   :  { %v968_v15 = vadd.f32 %v967_v7, %v966_v63  ;;  %v246_v43 = vrot.slane %v245_v27, 2  ;;  %v980_v44 = vadd.f32 %v979_v29, %v978_v17  ;;  %v880_v51 = vcombine.high %v3328_v30, %v3328_v30  ;;  %v3352_v63 = vld [vmem:[#allocation2 + $0x30] sm:$0xff] }
  0x55   :  { %v1453_v12 = vcombine.low %v947_v59, %v954_v5  ;;  %v983_v52 = vsel %vm172_vm0, %v3328_v30, 0.0  ;;  %v974_v53 = vrot.slane %v973_v36, 1  ;;  %v253_v34 = vrot.slane %v252_v46, 2 }
  0x56   :  { %v1454_v28 = vcombine.low %v961_v6, %v968_v15  ;;  %v984_v55 = vrot.slane %v983_v52, 4  ;;  %v247_v57 = vmax.f32 %v245_v27, %v246_v43  ;;  %v981_v59 = vrot.slane %v980_v44, 1 }
  0x57   :  { %2942 = vrcp.f32 %v1453_v12  ;;  %v2294_v61 = vrot.slane %v3237_v14, %v3209_v54  ;;  %v990_v62 = vsel %vm172_vm0, %v880_v51, 0.0  ;;  %v975_v0 = vadd.f32 %v974_v53, %v973_v36 }
  0x58   :  { %2944 = vrcp.f32 %v1454_v28  ;;  %v985_v2 = vadd.f32 %v984_v55, %v983_v52  ;;  %v991_v3 = vrot.slane %v990_v62, 4  ;;  %v248_v4 = vrot.slane %v247_v57, 1 }
  0x59   :  { %v982_v6 = vadd.f32 %v981_v59, %v980_v44  ;;  %v1614_v7 = vrot.slane %v3195_v42, %v3240_v16  ;;  %v3366_v8 = vsel %vm3336_vm8, 1.0, %v3135_v22  ;;  %v254_v9 = vmax.f32 %v252_v46, %v253_v34 }
  0x5a   :  { %v3370_v11 = vpop.eup %2940  ;;  %v986_v12 = vrot.slane %v985_v2, 2  ;;  %v992_v15 = vadd.f32 %v991_v3, %v990_v62  ;;  %v249_v33 = vmax.f32 %v247_v57, %v248_v4  ;;  %v114_v17 = vcombine.high %v3352_v63, %v3352_v63 }
  0x5b   :  { %v1455_v19 = vcombine.low %v975_v0, %v982_v6  ;;  %v881_v24 = vcombine.high %v3370_v11, %v3370_v11  ;;  %v997_v27 = vsel %vm172_vm0, %v3370_v11, 0.0  ;;  %v255_v28 = vrot.slane %v254_v9, 1 }
  0x5c   :  { %v987_v29 = vadd.f32 %v986_v12, %v985_v2  ;;  %v993_v20 = vrot.slane %v992_v15, 2  ;;  %v998_v46 = vrot.slane %v997_v27, 4  ;;  %v1618_v36 = vrot.slane %v3368_v10, %v3190_v38 }
  0x5d   :  { %2946 = vrcp.f32 %v1455_v19  ;;  %v1004_v43 = vsel %vm172_vm0, %v881_v24, 0.0  ;;  %v1622_v44 = vrot.slane %v3368_v10, %v3193_v39  ;;  %v256_v51 = vmax.f32 %v254_v9, %v255_v28 }
  0x5e   :  { %v988_v53 = vrot.slane %v987_v29, 1  ;;  %v994_v55 = vadd.f32 %v993_v20, %v992_v15  ;;  %v999_v57 = vadd.f32 %v998_v46, %v997_v27  ;;  %v1005_v59 = vrot.slane %v1004_v43, 4 }
  0x5f   :  { %v690_v62 = vcombine.low %v249_v33, %v256_v51  ;;  %v257_v60 = vsel %vm172_vm0, %v3352_v63, -inf  ;;  %v264_v0 = vsel %vm172_vm0, %v114_v17, -inf  ;;  %vm3414_vm13 = vcmp.eq.s32.totalorder %v1614_v7, %v3182_v25 }
  0x60   :  { %v989_v6 = vadd.f32 %v988_v53, %v987_v29  ;;  %v995_v9 = vrot.slane %v994_v55, 1  ;;  %v1000_v12 = vrot.slane %v999_v57, 2  ;;  %vm3421_vm14 = vcmp.eq.s32.totalorder %v2290_v26, 1 }
  0x61   :  { %v2943_v21 = vpop.eup %2942  ;;  %v754_v15 = vsub.f32 %v3299_v31, %v690_v62  ;;  %vm3431_vm15 = vcmp.eq.s32.totalorder %v2294_v61, 1  ;;  %vm3445_vm1 = vcmp.eq.s32.totalorder %v1618_v36, %v3182_v25  ;;  %vm3456_vm2 = vcmp.eq.s32.totalorder %v1622_v44, %v3182_v25 }
  0x62   :  { %v1518_v52 = vmul.f32 %v2943_v21, %v3273_v45  ;;  %v2945_v34 = vpop.eup %2944  ;;  %v1006_v45 = vadd.f32 %v1005_v59, %v1004_v43  ;;  %v1001_v31 = vadd.f32 %v1000_v12, %v999_v57  ;;  %vm2032_vm3 = vcmp.ge.s32.totalorder %v3368_v10, 0 }
  0x63   :  { %v1520_v4 = vmul.f32 %v2945_v34, %v3284_v58  ;;  %v996_v58 = vadd.f32 %v995_v9, %v994_v55  ;;  %v3474_v44 = vsel %vm3445_vm1, 1.0, %v3135_v22 }
  0x64   :  { %v2071_v2 = vcombine.high %v1518_v52, %v1518_v52  ;;  %v2135_v3 = vsub.f32 %v3247_v23, %v1518_v52  ;;  %v1007_v28 = vrot.slane %v1006_v45, 2  ;;  %v1002_v21 = vrot.slane %v1001_v31, 1 }
  0x65   :  { %v2072_v33 = vcombine.high %v1520_v4, %v1520_v4  ;;  %v2137_v27 = vsub.f32 %v3271_v41, %v1520_v4  ;;  %v1456_v26 = vcombine.low %v989_v6, %v996_v58 }
  0x66   :  { %v2136_v19 = vsub.f32 %v3261_v32, %v2071_v2  ;;  %v2199_v24 = vand.u32 2147483647, %v2135_v3  ;;  %v791_v32 = vmul.f32 1.442695, %v754_v15  ;;  %v1008_v43 = vadd.f32 %v1007_v28, %v1006_v45 }
  0x67   :  { %v2138_v7 = vsub.f32 %v3282_v56, %v2072_v33  ;;  %v2201_v20 = vand.u32 2147483647, %v2137_v27  ;;  %v258_v56 = vrot.slane %v257_v60, 4  ;;  %v2947_v53 = vpop.eup %2946  ;;  %v1003_v57 = vadd.f32 %v1002_v21, %v1001_v31 }
  0x68   :  { %v2200_v29 = vand.u32 2147483647, %v2136_v19  ;;  %v2591_v41 = vsel %vm3357_vm9, %v2199_v24, 0.0  ;;  %2948 = vpow2.f32 %v791_v32  ;;  %v1009_v61 = vrot.slane %v1008_v43, 1  ;;  %v3462_v19 = vld [vmem:[#allocation2 + $0x38] sm:$0xff] }
  0x69   :  { %v2202_v52 = vand.u32 2147483647, %v2138_v7  ;;  %v2593_v5 = vsel %vm3384_vm11, %v2201_v20, 0.0  ;;  %2950 = vrcp.f32 %v1456_v26  ;;  %v1522_v59 = vmul.f32 %v2947_v53, %v3308_v37 }
  0x6a   :  { %v2592_v51 = vsel %vm3377_vm10, %v2200_v29, 0.0  ;;  %v259_v62 = vmax.f32 %v257_v60, %v258_v56  ;;  %v265_v2 = vrot.slane %v264_v0, 4  ;;  %v2298_v3 = vrot.slane %v3237_v14, %v3224_v1 }
  0x6b   :  { %v2719_v55 = vcombine.low %v2591_v41, %v2592_v51  ;;  %v2594_v34 = vsel %vm3397_vm12, %v2202_v52, 0.0  ;;  %v1010_v18 = vadd.f32 %v1009_v61, %v1008_v43  ;;  %v2073_v6 = vcombine.high %v1522_v59, %v1522_v59 }
  0x6c   :  { %v2720_v42 = vcombine.low %v2593_v5, %v2594_v34  ;;  %v2139_v9 = vsub.f32 %v3333_v40, %v1522_v59  ;;  %v260_v49 = vrot.slane %v259_v62, 2  ;;  %v266_v12 = vmax.f32 %v264_v0, %v265_v2 }
  0x6d   :  { %2783 = vst [vmem:[#allocation7] sm:$0xff] %v2719_v55  ;;  %v2302_v37 = vrot.slane %v3237_v14, %v3240_v16  ;;  %v1457_v60 = vcombine.low %v1003_v57, %v1010_v18  ;;  %v2140_v36 = vsub.f32 %v3347_v35, %v2073_v6  ;;  %v2838_v14 = vsel %vm3414_vm13, 1.0, %v3135_v22 }
  0x6e   :  { %2784 = vst [vmem:[#allocation7 + $0x8] sm:$0xff] %v2720_v42  ;;  %v2203_v40 = vand.u32 2147483647, %v2139_v9  ;;  %v261_v15 = vmax.f32 %v259_v62, %v260_v49  ;;  %v267_v0 = vrot.slane %v266_v12, 2  ;;  %vm3467_vm4 = vcmp.eq.s32.totalorder %v2298_v3, 1 }
  0x6f   :  { %2952 = vrcp.f32 %v1457_v60  ;;  %v2204_v35 = vand.u32 2147483647, %v2140_v36  ;;  %vm3480_vm5 = vcmp.eq.s32.totalorder %v2302_v37, 1  ;;  %v2840_v28 = vsel %vm3456_vm2, 1.0, %v3135_v22 }
  0x70   :  { %v2595_v33 = vsel %vm3421_vm14, %v2203_v40, 0.0  ;;  %v262_v27 = vrot.slane %v261_v15, 1  ;;  %v268_v58 = vmax.f32 %v266_v12, %v267_v0  ;;  %v3490_v32 = vsel %vm2032_vm3, 1, %v3134_v13 }
  0x71   :  { %v115_v23 = vcombine.high %v3462_v19, %v3462_v19  ;;  %v271_v29 = vsel %vm172_vm0, %v3462_v19, -inf  ;;  %v2596_v41 = vsel %vm3431_vm15, %v2204_v35, 0.0  ;;  %v2306_v53 = vrot.slane %v3490_v32, %v3190_v38 }
  0x72   :  { %v3478_v31 = vpop.eup %2948  ;;  %v263_v26 = vmax.f32 %v261_v15, %v262_v27  ;;  %v2721_v43 = vcombine.low %v2595_v33, %v2596_v41  ;;  %v269_v52 = vrot.slane %v268_v58, 1  ;;  %v272_v5 = vrot.slane %v271_v29, 4 }
  0x73   :  { %v882_v7 = vcombine.high %v3478_v31, %v3478_v31  ;;  %v1011_v20 = vsel %vm172_vm0, %v3478_v31, 0.0  ;;  %v2951_v21 = vpop.eup %2950  ;;  %v278_v55 = vsel %vm172_vm0, %v115_v23, -inf  ;;  %v2310_v42 = vrot.slane %v3490_v32, %v3193_v39 }
  0x74   :  { %v1012_v51 = vrot.slane %v1011_v20, 4  ;;  %v1524_v56 = vmul.f32 %v2951_v21, %v3328_v30  ;;  %2785 = vst [vmem:[#allocation7 + $0x10] sm:$0xff] %v2721_v43  ;;  %v270_v34 = vmax.f32 %v268_v58, %v269_v52  ;;  %v273_v59 = vmax.f32 %v271_v29, %v272_v5  ;;  %v3521_v52 = vld [vmem:[#allocation2 + $0x40] sm:$0xff] }
  0x75   :  { %v1018_v46 = vsel %vm172_vm0, %v882_v7, 0.0  ;;  %v279_v3 = vrot.slane %v278_v55, 4  ;;  %vm3510_vm6 = vcmp.eq.s32.totalorder %v2306_v53, 1  ;;  %vm2536_vm7 = vcmp.eq.s32.totalorder %v2310_v42, 1 }
  0x76   :  { %v1013_v57 = vadd.f32 %v1012_v51, %v1011_v20  ;;  %v1019_v61 = vrot.slane %v1018_v46, 4  ;;  %v2074_v62 = vcombine.high %v1524_v56, %v1524_v56  ;;  %v2141_v2 = vsub.f32 %v3366_v8, %v1524_v56 }
  0x77   :  { %v691_v4 = vcombine.low %v263_v26, %v270_v34  ;;  %v274_v6 = vrot.slane %v273_v59, 2  ;;  %v280_v37 = vmax.f32 %v278_v55, %v279_v3 }
  0x78   :  { %v1014_v30 = vrot.slane %v1013_v57, 2  ;;  %v1020_v18 = vadd.f32 %v1019_v61, %v1018_v46  ;;  %v2142_v9 = vsub.f32 %v2838_v14, %v2074_v62  ;;  %v2205_v49 = vand.u32 2147483647, %v2141_v2  ;;  %v3533_v2 = vld [vmem:[#allocation2 + $0x48] sm:$0xff] }
  0x79   :  { %v2953_v60 = vpop.eup %2952  ;;  %v755_v8 = vsub.f32 %v3352_v63, %v691_v4  ;;  %v275_v40 = vmax.f32 %v273_v59, %v274_v6  ;;  %v281_v33 = vrot.slane %v280_v37, 2  ;;  %v116_v46 = vcombine.high %v3521_v52, %v3521_v52 }
  0x7a   :  { %v1015_v45 = vadd.f32 %v1014_v30, %v1013_v57  ;;  %v1021_v36 = vrot.slane %v1020_v18, 2  ;;  %v2206_v15 = vand.u32 2147483647, %v2142_v9  ;;  %v2597_v0 = vsel %vm3467_vm4, %v2205_v49, 0.0 }
  0x7b   :  { %v1526_v35 = vmul.f32 %v2953_v60, %v3370_v11  ;;  %v793_v58 = vmul.f32 1.442695, %v755_v8  ;;  %v276_v23 = vrot.slane %v275_v40, 1  ;;  %v282_v20 = vmax.f32 %v280_v37, %v281_v33 }
  0x7c   :  { %v1016_v14 = vrot.slane %v1015_v45, 1  ;;  %v1022_v27 = vadd.f32 %v1021_v36, %v1020_v18  ;;  %v2598_v29 = vsel %vm3480_vm5, %v2206_v15, 0.0  ;;  %v285_v61 = vsel %vm172_vm0, %v3521_v52, -inf }
  0x7d   :  { %v2075_v41 = vcombine.high %v1526_v35, %v1526_v35  ;;  %v2143_v7 = vsub.f32 %v3474_v44, %v1526_v35  ;;  %v2722_v63 = vcombine.low %v2597_v0, %v2598_v29  ;;  %2954 = vpow2.f32 %v793_v58 }
  0x7e   :  { %v1017_v26 = vadd.f32 %v1016_v14, %v1015_v45  ;;  %v1023_v21 = vrot.slane %v1022_v27, 1  ;;  %v277_v51 = vmax.f32 %v275_v40, %v276_v23  ;;  %v283_v11 = vrot.slane %v282_v20, 1 }
  0x7f   :  { %v2144_v24 = vsub.f32 %v2840_v28, %v2075_v41  ;;  %v2207_v43 = vand.u32 2147483647, %v2143_v7  ;;  %2786 = vst [vmem:[#allocation7 + $0x18] sm:$0xff] %v2722_v63  ;;  %v1626_v28 = vrot.slane %v3368_v10, %v3200_v47  ;;  %v1630_v59 = vrot.slane %v3368_v10, %v3203_v48  ;;  %v3588_v7 = vld [vmem:[#allocation2 + $0x50] sm:$0xff] }
  0x80   :  { %v1024_v5 = vadd.f32 %v1023_v21, %v1022_v27  ;;  %v284_v53 = vmax.f32 %v282_v20, %v283_v11  ;;  %v286_v62 = vrot.slane %v285_v61, 4  ;;  %v292_v3 = vsel %vm172_vm0, %v116_v46, -inf }
  0x81   :  { %v2208_v56 = vand.u32 2147483647, %v2144_v24  ;;  %v2599_v17 = vsel %vm3510_vm6, %v2207_v43, 0.0  ;;  %v293_v18 = vrot.slane %v292_v3, 4  ;;  %vm1849_vm8 = vcmp.eq.s32.totalorder %v1626_v28, %v3182_v25 }
  0x82   :  { %v1458_v44 = vcombine.low %v1017_v26, %v1024_v5  ;;  %v692_v57 = vcombine.low %v277_v51, %v284_v53  ;;  %v287_v30 = vmax.f32 %v285_v61, %v286_v62  ;;  %v117_v6 = vcombine.high %v3533_v2, %v3533_v2 }
  0x83   :  { %v2600_v55 = vsel %vm2536_vm7, %v2208_v56, 0.0  ;;  %vm3543_vm9 = vcmp.eq.s32.totalorder %v1630_v59, %v3182_v25  ;;  %v2314_v37 = vrot.slane %v3490_v32, %v3200_v47  ;;  %v2841_v36 = vsel %vm1849_vm8, 1.0, %v3135_v22 }
  0x84   :  { %v2723_v34 = vcombine.low %v2599_v17, %v2600_v55  ;;  %2956 = vrcp.f32 %v1458_v44  ;;  %v756_v42 = vsub.f32 %v3462_v19, %v692_v57  ;;  %v288_v12 = vrot.slane %v287_v30, 2 }
  0x85   :  { %v294_v19 = vmax.f32 %v292_v3, %v293_v18  ;;  %v2318_v0 = vrot.slane %v3490_v32, %v3203_v48  ;;  %v299_v33 = vsel %vm172_vm0, %v3533_v2, -inf  ;;  %v306_v14 = vsel %vm172_vm0, %v117_v6, -inf }
  0x86   :  { %2787 = vst [vmem:[#allocation7 + $0x20] sm:$0xff] %v2723_v34  ;;  %v795_v4 = vmul.f32 1.442695, %v756_v42  ;;  %v289_v40 = vmax.f32 %v287_v30, %v288_v12  ;;  %v2842_v41 = vsel %vm3543_vm9, 1.0, %v3135_v22  ;;  %vm3563_vm10 = vcmp.eq.s32.totalorder %v2314_v37, 1 }
  0x87   :  { %v3540_v9 = vpop.eup %2954  ;;  %v295_v15 = vrot.slane %v294_v19, 2  ;;  %v300_v20 = vrot.slane %v299_v33, 4  ;;  %v307_v63 = vrot.slane %v306_v14, 4  ;;  %vm3568_vm11 = vcmp.eq.s32.totalorder %v2318_v0, 1 }
  0x88   :  { %v883_v60 = vcombine.high %v3540_v9, %v3540_v9  ;;  %v1025_v45 = vsel %vm172_vm0, %v3540_v9, 0.0  ;;  %2958 = vpow2.f32 %v795_v4  ;;  %v290_v23 = vrot.slane %v289_v40, 1 }
  0x89   :  { %v1026_v8 = vrot.slane %v1025_v45, 4  ;;  %v296_v29 = vmax.f32 %v294_v19, %v295_v15  ;;  %v301_v56 = vmax.f32 %v299_v33, %v300_v20  ;;  %v308_v17 = vmax.f32 %v306_v14, %v307_v63 }
  0x8a   :  { %v1032_v35 = vsel %vm172_vm0, %v883_v60, 0.0  ;;  %v291_v43 = vmax.f32 %v289_v40, %v290_v23  ;;  %v1634_v46 = vrot.slane %v3368_v10, %v3206_v50  ;;  %v118_v5 = vcombine.high %v3588_v7, %v3588_v7 }
  0x8b   :  { %v1027_v27 = vadd.f32 %v1026_v8, %v1025_v45  ;;  %v1033_v58 = vrot.slane %v1032_v35, 4  ;;  %v297_v51 = vrot.slane %v296_v29, 1  ;;  %v302_v61 = vrot.slane %v301_v56, 2 }
  0x8c   :  { %v309_v34 = vrot.slane %v308_v17, 2  ;;  %vm3591_vm12 = vcmp.eq.s32.totalorder %v1634_v46, %v3182_v25 }
  0x8d   :  { %v1028_v21 = vrot.slane %v1027_v27, 2  ;;  %v1034_v24 = vadd.f32 %v1033_v58, %v1032_v35  ;;  %v298_v55 = vmax.f32 %v296_v29, %v297_v51  ;;  %v303_v4 = vmax.f32 %v301_v56, %v302_v61 }
  0x8e   :  { %v2957_v26 = vpop.eup %2956  ;;  %v310_v6 = vmax.f32 %v308_v17, %v309_v34  ;;  %v313_v56 = vsel %vm172_vm0, %v3588_v7, -inf  ;;  %v2322_v17 = vrot.slane %v3490_v32, %v3206_v50  ;;  %v320_v61 = vsel %vm172_vm0, %v118_v5, -inf }
  0x8f   :  { %v1528_v11 = vmul.f32 %v2957_v26, %v3478_v31  ;;  %v1029_v53 = vadd.f32 %v1028_v21, %v1027_v27  ;;  %v1035_v44 = vrot.slane %v1034_v24, 2  ;;  %v1638_v31 = vrot.slane %v3368_v10, %v3209_v54 }
  0x90   :  { %v693_v42 = vcombine.low %v291_v43, %v298_v55  ;;  %v304_v0 = vrot.slane %v303_v4, 1  ;;  %v311_v35 = vrot.slane %v310_v6, 1  ;;  %v314_v46 = vrot.slane %v313_v56, 4 }
  0x91   :  { %v2076_v28 = vcombine.high %v1528_v11, %v1528_v11  ;;  %v2145_v57 = vsub.f32 %v2841_v36, %v1528_v11  ;;  %v1030_v59 = vrot.slane %v1029_v53, 1  ;;  %v1036_v62 = vadd.f32 %v1035_v44, %v1034_v24 }
  0x92   :  { %v3576_v3 = vpop.eup %2958  ;;  %v757_v8 = vsub.f32 %v3521_v52, %v693_v42  ;;  %v312_v20 = vmax.f32 %v310_v6, %v311_v35  ;;  %vm3596_vm13 = vcmp.eq.s32.totalorder %v1638_v31, %v3182_v25  ;;  %v1642_v24 = vrot.slane %v3368_v10, %v3224_v1 }
  0x93   :  { %v2146_v30 = vsub.f32 %v2842_v41, %v2076_v28  ;;  %v2209_v18 = vand.u32 2147483647, %v2145_v57  ;;  %v1031_v49 = vadd.f32 %v1030_v59, %v1029_v53  ;;  %v1037_v12 = vrot.slane %v1036_v62, 1 }
  0x94   :  { %v884_v19 = vcombine.high %v3576_v3, %v3576_v3  ;;  %v1039_v37 = vsel %vm172_vm0, %v3576_v3, 0.0  ;;  %v797_v58 = vmul.f32 1.442695, %v757_v8  ;;  %v305_v41 = vmax.f32 %v303_v4, %v304_v0  ;;  %v3629_v4 = vld [vmem:[#allocation5 + $0x10] sm:$0xff] }
  0x95   :  { %v2210_v60 = vand.u32 2147483647, %v2146_v30  ;;  %v2601_v45 = vsel %vm3563_vm10, %v2209_v18, 0.0  ;;  %v1040_v36 = vrot.slane %v1039_v37, 4  ;;  %v1038_v40 = vadd.f32 %v1037_v12, %v1036_v62  ;;  %v3622_v30 = vld [vmem:[#allocation2 + $0x58] sm:$0xff] }
  0x96   :  { %v1046_v15 = vsel %vm172_vm0, %v884_v19, 0.0  ;;  %2960 = vpow2.f32 %v797_v58  ;;  %v694_v43 = vcombine.low %v305_v41, %v312_v20  ;;  %v1646_v53 = vrot.slane %v3368_v10, %v3240_v16 }
  0x97   :  { %v2602_v33 = vsel %vm3568_vm11, %v2210_v60, 0.0  ;;  %v1041_v14 = vadd.f32 %v1040_v36, %v1039_v37  ;;  %v1047_v27 = vrot.slane %v1046_v15, 4  ;;  %v1459_v29 = vcombine.low %v1031_v49, %v1038_v40 }
  0x98   :  { %v2724_v23 = vcombine.low %v2601_v45, %v2602_v33  ;;  %v758_v44 = vsub.f32 %v3533_v2, %v694_v43  ;;  %v2326_v55 = vrot.slane %v3490_v32, %v3209_v54  ;;  %vm3615_vm14 = vcmp.eq.s32.totalorder %v1642_v24, %v3182_v25 }
  0x99   :  { %v1042_v63 = vrot.slane %v1041_v14, 2  ;;  %v1048_v26 = vadd.f32 %v1047_v27, %v1046_v15  ;;  %2962 = vrcp.f32 %v1459_v29  ;;  %v315_v62 = vmax.f32 %v313_v56, %v314_v46 }
  0x9a   :  { %2788 = vst [vmem:[#allocation7 + $0x28] sm:$0xff] %v2724_v23  ;;  %v799_v59 = vmul.f32 1.442695, %v758_v44  ;;  %v321_v31 = vrot.slane %v320_v61, 4  ;;  %v2843_v10 = vsel %vm3591_vm12, 1.0, %v3135_v22  ;;  %vm3625_vm15 = vcmp.eq.s32.totalorder %v1646_v53, %v3182_v25 }
  0x9b   :  { %v1043_v51 = vadd.f32 %v1042_v63, %v1041_v14  ;;  %v1049_v11 = vrot.slane %v1048_v26, 2  ;;  %v316_v6 = vrot.slane %v315_v62, 2  ;;  %v2844_v12 = vsel %vm3596_vm13, 1.0, %v3135_v22 }
  0x9c   :  { %2964 = vpow2.f32 %v799_v59  ;;  %v322_v49 = vmax.f32 %v320_v61, %v321_v31  ;;  %vm3634_vm1 = vcmp.eq.s32.totalorder %v2322_v17, 1  ;;  %v3641_v60 = vsel %vm3615_vm14, 1.0, %v3135_v22 }
  0x9d   :  { %v1044_v28 = vrot.slane %v1043_v51, 1  ;;  %v1050_v57 = vadd.f32 %v1049_v11, %v1048_v26  ;;  %vm3643_vm2 = vcmp.eq.s32.totalorder %v2326_v55, 1  ;;  %v2330_v36 = vrot.slane %v3490_v32, %v3224_v1 }
  0x9e   :  { %v317_v8 = vmax.f32 %v315_v62, %v316_v6  ;;  %v323_v40 = vrot.slane %v322_v49, 2  ;;  %v119_v15 = vcombine.high %v3622_v30, %v3622_v30  ;;  %v3656_v33 = vsel %vm3625_vm15, 1.0, %v3135_v22 }
  0x9f   :  { %v1045_v2 = vadd.f32 %v1044_v28, %v1043_v51  ;;  %v1051_v42 = vrot.slane %v1050_v57, 1  ;;  %v1650_v14 = vrot.slane %v3629_v4, %v3190_v38  ;;  %v327_v27 = vsel %vm172_vm0, %v3622_v30, -inf }
  0xa0   :  { %v3651_v0 = vpop.eup %2960  ;;  %v318_v41 = vrot.slane %v317_v8, 1  ;;  %v324_v20 = vmax.f32 %v322_v49, %v323_v40  ;;  %v328_v26 = vrot.slane %v327_v27, 4  ;;  %v334_v51 = vsel %vm172_vm0, %v119_v15, -inf }
  0xa1   :  { %v1052_v37 = vadd.f32 %v1051_v42, %v1050_v57  ;;  %v885_v23 = vcombine.high %v3651_v0, %v3651_v0  ;;  %v1053_v29 = vsel %vm172_vm0, %v3651_v0, 0.0  ;;  %v2334_v53 = vrot.slane %v3490_v32, %v3240_v16 }
  0xa2   :  { %v1054_v63 = vrot.slane %v1053_v29, 4  ;;  %v319_v24 = vmax.f32 %v317_v8, %v318_v41  ;;  %v325_v43 = vrot.slane %v324_v20, 1  ;;  %v329_v46 = vmax.f32 %v327_v27, %v328_v26 }
  0xa3   :  { %v1460_v35 = vcombine.low %v1045_v2, %v1052_v37  ;;  %v2963_v58 = vpop.eup %2962  ;;  %v1060_v21 = vsel %vm172_vm0, %v885_v23, 0.0  ;;  %v335_v55 = vrot.slane %v334_v51, 4  ;;  %vm3674_vm3 = vcmp.eq.s32.totalorder %v1650_v14, %v3182_v25 }
  0xa4   :  { %v1530_v52 = vmul.f32 %v2963_v58, %v3540_v9  ;;  %v1055_v56 = vadd.f32 %v1054_v63, %v1053_v29  ;;  %v1061_v17 = vrot.slane %v1060_v21, 4  ;;  %v326_v44 = vmax.f32 %v324_v20, %v325_v43 }
  0xa5   :  { %2966 = vrcp.f32 %v1460_v35  ;;  %v330_v31 = vrot.slane %v329_v46, 2  ;;  %vm3680_vm4 = vcmp.eq.s32.totalorder %v2330_v36, 1  ;;  %vm3691_vm5 = vcmp.eq.s32.totalorder %v2334_v53, 1 }
  0xa6   :  { %v2077_v11 = vcombine.high %v1530_v52, %v1530_v52  ;;  %v2147_v5 = vsub.f32 %v2843_v10, %v1530_v52  ;;  %v1056_v57 = vrot.slane %v1055_v56, 2  ;;  %v1062_v61 = vadd.f32 %v1061_v17, %v1060_v21  ;;  %v3671_v34 = vpop.eup %2964 }
  0xa7   :  { %v695_v62 = vcombine.low %v319_v24, %v326_v44  ;;  %v336_v10 = vmax.f32 %v334_v51, %v335_v55  ;;  %v886_v49 = vcombine.high %v3671_v34, %v3671_v34  ;;  %v331_v8 = vmax.f32 %v329_v46, %v330_v31 }
  0xa8   :  { %v2148_v9 = vsub.f32 %v2844_v12, %v2077_v11  ;;  %v2211_v28 = vand.u32 2147483647, %v2147_v5  ;;  %v1057_v18 = vadd.f32 %v1056_v57, %v1055_v56  ;;  %v1063_v6 = vrot.slane %v1062_v61, 2 }
  0xa9   :  { %v1067_v12 = vsel %vm172_vm0, %v3671_v34, 0.0  ;;  %v759_v37 = vsub.f32 %v3588_v7, %v695_v62  ;;  %vm2033_vm6 = vcmp.ge.s32.totalorder %v3629_v4, 0  ;;  %v1074_v27 = vsel %vm172_vm0, %v886_v49, 0.0 }
  0xaa   :  { %v2212_v2 = vand.u32 2147483647, %v2148_v9  ;;  %v2603_v32 = vsel %vm3634_vm1, %v2211_v28, 0.0  ;;  %v1058_v36 = vrot.slane %v1057_v18, 1  ;;  %v1064_v15 = vadd.f32 %v1063_v6, %v1062_v61 }
  0xab   :  { %v1068_v35 = vrot.slane %v1067_v12, 4  ;;  %v801_v58 = vmul.f32 1.442695, %v759_v37  ;;  %v1075_v20 = vrot.slane %v1074_v27, 4  ;;  %v332_v52 = vrot.slane %v331_v8, 1 }
  0xac   :  { %v2604_v40 = vsel %vm3643_vm2, %v2212_v2, 0.0  ;;  %v1059_v29 = vadd.f32 %v1058_v36, %v1057_v18  ;;  %v1065_v7 = vrot.slane %v1064_v15, 1  ;;  %v337_v63 = vrot.slane %v336_v10, 2 }
  0xad   :  { %v2725_v14 = vcombine.low %v2603_v32, %v2604_v40  ;;  %v1069_v41 = vadd.f32 %v1068_v35, %v1067_v12  ;;  %2968 = vpow2.f32 %v801_v58  ;;  %v1654_v21 = vrot.slane %v3629_v4, %v3193_v39 }
  0xae   :  { %v1066_v26 = vadd.f32 %v1065_v7, %v1064_v15  ;;  %v1076_v43 = vadd.f32 %v1075_v20, %v1074_v27  ;;  %v3704_v5 = vsel %vm3674_vm3, 1.0, %v3135_v22  ;;  %v338_v56 = vmax.f32 %v336_v10, %v337_v63 }
  0xaf   :  { %v2967_v23 = vpop.eup %2966  ;;  %2789 = vst [vmem:[#allocation7 + $0x30] sm:$0xff] %v2725_v14  ;;  %v1070_v24 = vrot.slane %v1069_v41, 2  ;;  %v333_v9 = vmax.f32 %v331_v8, %v332_v52  ;;  %vm3715_vm7 = vcmp.eq.s32.totalorder %v1654_v21, %v3182_v25  ;;  %v1658_v12 = vrot.slane %v3629_v4, %v3200_v47 }
  0xb0   :  { %v1532_v45 = vmul.f32 %v2967_v23, %v3576_v3  ;;  %v1461_v17 = vcombine.low %v1059_v29, %v1066_v26  ;;  %v3709_v3 = vsel %vm2033_vm6, 1, %v3134_v13  ;;  %v1077_v44 = vrot.slane %v1076_v43, 2 }
  0xb1   :  { %v1071_v53 = vadd.f32 %v1070_v24, %v1069_v41  ;;  %v339_v28 = vrot.slane %v338_v56, 1  ;;  %v2342_v2 = vrot.slane %v3709_v3, %v3193_v39  ;;  %v2848_v14 = vsel %vm3715_vm7, 1.0, %v3135_v22 }
  0xb2   :  { %v2078_v51 = vcombine.high %v1532_v45, %v1532_v45  ;;  %v2149_v11 = vsub.f32 %v3641_v60, %v1532_v45  ;;  %v3712_v60 = vld [vmem:[#allocation2 + $0x60] sm:$0xff]  ;;  %2970 = vrcp.f32 %v1461_v17  ;;  %v1078_v59 = vadd.f32 %v1077_v44, %v1076_v43 }
  0xb3   :  { %v1072_v61 = vrot.slane %v1071_v53, 1  ;;  %v340_v10 = vmax.f32 %v338_v56, %v339_v28  ;;  %v120_v6 = vcombine.high %v3712_v60, %v3712_v60  ;;  %v341_v37 = vsel %vm172_vm0, %v3712_v60, -inf }
  0xb4   :  { %v2150_v46 = vsub.f32 %v3656_v33, %v2078_v51  ;;  %v2213_v55 = vand.u32 2147483647, %v2149_v11  ;;  %v2338_v33 = vrot.slane %v3709_v3, %v3190_v38  ;;  %v1079_v18 = vrot.slane %v1078_v59, 1 }
  0xb5   :  { %v1073_v32 = vadd.f32 %v1072_v61, %v1071_v53  ;;  %v696_v42 = vcombine.low %v333_v9, %v340_v10  ;;  %v342_v36 = vrot.slane %v341_v37, 4  ;;  %v348_v15 = vsel %vm172_vm0, %v120_v6, -inf }
  0xb6   :  { %v2214_v62 = vand.u32 2147483647, %v2150_v46  ;;  %v2605_v31 = vsel %vm3680_vm4, %v2213_v55, 0.0  ;;  %v1080_v40 = vadd.f32 %v1079_v18, %v1078_v59  ;;  %v1662_v19 = vrot.slane %v3629_v4, %v3203_v48 }
  0xb7   :  { %v3734_v35 = vpop.eup %2968  ;;  %v760_v27 = vsub.f32 %v3622_v30, %v696_v42  ;;  %v349_v58 = vrot.slane %v348_v15, 4  ;;  %vm3742_vm8 = vcmp.eq.s32.totalorder %v2338_v33, 1  ;;  %v343_v20 = vmax.f32 %v341_v37, %v342_v36  ;;  %v3751_v30 = vld [vmem:[#allocation2 + $0x68] sm:$0xff] }
  0xb8   :  { %v2606_v49 = vsel %vm3691_vm5, %v2214_v62, 0.0  ;;  %v1462_v29 = vcombine.low %v1073_v32, %v1080_v40  ;;  %v887_v7 = vcombine.high %v3734_v35, %v3734_v35  ;;  %v1081_v41 = vsel %vm172_vm0, %v3734_v35, 0.0 }
  0xb9   :  { %v2726_v8 = vcombine.low %v2605_v31, %v2606_v49  ;;  %vm1857_vm9 = vcmp.eq.s32.totalorder %v1658_v12, %v3182_v25  ;;  %v1082_v45 = vrot.slane %v1081_v41, 4  ;;  %v803_v52 = vmul.f32 1.442695, %v760_v27 }
  0xba   :  { %v350_v63 = vmax.f32 %v348_v15, %v349_v58  ;;  %vm3753_vm10 = vcmp.eq.s32.totalorder %v2342_v2, 1  ;;  %2972 = vrcp.f32 %v1462_v29  ;;  %v1088_v21 = vsel %vm172_vm0, %v887_v7, 0.0 }
  0xbb   :  { %2790 = vst [vmem:[#allocation7 + $0x38] sm:$0xff] %v2726_v8  ;;  %v344_v24 = vrot.slane %v343_v20, 2  ;;  %v1083_v43 = vadd.f32 %v1082_v45, %v1081_v41  ;;  %v1089_v51 = vrot.slane %v1088_v21, 4  ;;  %2974 = vpow2.f32 %v803_v52 }
  0xbc   :  { %v351_v11 = vrot.slane %v350_v63, 2  ;;  %v2971_v56 = vpop.eup %2970  ;;  %vm3759_vm11 = vcmp.eq.s32.totalorder %v1662_v19, %v3182_v25  ;;  %v2849_v53 = vsel %vm1857_vm9, 1.0, %v3135_v22  ;;  %v121_v46 = vcombine.high %v3751_v30, %v3751_v30 }
  0xbd   :  { %v345_v44 = vmax.f32 %v343_v20, %v344_v24  ;;  %v1534_v55 = vmul.f32 %v2971_v56, %v3651_v0  ;;  %v1084_v9 = vrot.slane %v1083_v43, 2  ;;  %v1090_v28 = vadd.f32 %v1089_v51, %v1088_v21 }
  0xbe   :  { %v352_v57 = vmax.f32 %v350_v63, %v351_v11  ;;  %v2346_v61 = vrot.slane %v3709_v3, %v3200_v47  ;;  %v2350_v59 = vrot.slane %v3709_v3, %v3203_v48  ;;  %v355_v31 = vsel %vm172_vm0, %v3751_v30, -inf }
  0xbf   :  { %v346_v62 = vrot.slane %v345_v44, 1  ;;  %v2079_v33 = vcombine.high %v1534_v55, %v1534_v55  ;;  %v2151_v10 = vsub.f32 %v3704_v5, %v1534_v55  ;;  %v1085_v2 = vadd.f32 %v1084_v9, %v1083_v43 }
  0xc0   :  { %v1091_v32 = vrot.slane %v1090_v28, 2  ;;  %v2850_v0 = vsel %vm3759_vm11, 1.0, %v3135_v22  ;;  %v353_v6 = vrot.slane %v352_v57, 1  ;;  %v362_v49 = vsel %vm172_vm0, %v121_v46, -inf }
  0xc1   :  { %v347_v18 = vmax.f32 %v345_v44, %v346_v62  ;;  %v2152_v12 = vsub.f32 %v2848_v14, %v2079_v33  ;;  %v2215_v42 = vand.u32 2147483647, %v2151_v10  ;;  %v1086_v37 = vrot.slane %v1085_v2, 1 }
  0xc2   :  { %v1092_v8 = vadd.f32 %v1091_v32, %v1090_v28  ;;  %vm3778_vm12 = vcmp.eq.s32.totalorder %v2346_v61, 1  ;;  %vm3782_vm13 = vcmp.eq.s32.totalorder %v2350_v59, 1  ;;  %v354_v36 = vmax.f32 %v352_v57, %v353_v6  ;;  %v3810_v6 = vld [vmem:[#allocation2 + $0x70] sm:$0xff] }
  0xc3   :  { %v356_v15 = vrot.slane %v355_v31, 4  ;;  %v2216_v19 = vand.u32 2147483647, %v2152_v12  ;;  %v2607_v27 = vsel %vm3742_vm8, %v2215_v42, 0.0  ;;  %v1087_v58 = vadd.f32 %v1086_v37, %v1085_v2 }
  0xc4   :  { %v1093_v29 = vrot.slane %v1092_v8, 1  ;;  %v2973_v14 = vpop.eup %2972  ;;  %v1666_v7 = vrot.slane %v3629_v4, %v3206_v50  ;;  %v697_v41 = vcombine.low %v347_v18, %v354_v36  ;;  %v363_v45 = vrot.slane %v362_v49, 4 }
  0xc5   :  { %v357_v20 = vmax.f32 %v355_v31, %v356_v15  ;;  %v3790_v52 = vpop.eup %2974  ;;  %v2608_v63 = vsel %vm3753_vm10, %v2216_v19, 0.0  ;;  %v1536_v21 = vmul.f32 %v2973_v14, %v3671_v34  ;;  %v1670_v23 = vrot.slane %v3629_v4, %v3209_v54 }
  0xc6   :  { %v1094_v24 = vadd.f32 %v1093_v29, %v1092_v8  ;;  %v2727_v43 = vcombine.low %v2607_v27, %v2608_v63  ;;  %v888_v51 = vcombine.high %v3790_v52, %v3790_v52  ;;  %v1095_v11 = vsel %vm172_vm0, %v3790_v52, 0.0 }
  0xc7   :  { %v761_v56 = vsub.f32 %v3712_v60, %v697_v41  ;;  %v2080_v17 = vcombine.high %v1536_v21, %v1536_v21  ;;  %v2153_v44 = vsub.f32 %v2849_v53, %v1536_v21  ;;  %v1096_v26 = vrot.slane %v1095_v11, 4 }
  0xc8   :  { %v1463_v46 = vcombine.low %v1087_v58, %v1094_v24  ;;  %2791 = vst [vmem:[#allocation7 + $0x40] sm:$0xff] %v2727_v43  ;;  %v1102_v34 = vsel %vm172_vm0, %v888_v51, 0.0  ;;  %v358_v9 = vrot.slane %v357_v20, 2  ;;  %v364_v28 = vmax.f32 %v362_v49, %v363_v45 }
  0xc9   :  { %v805_v55 = vmul.f32 1.442695, %v761_v56  ;;  %v2154_v57 = vsub.f32 %v2850_v0, %v2080_v17  ;;  %v2217_v61 = vand.u32 2147483647, %v2153_v44  ;;  %v1097_v59 = vadd.f32 %v1096_v26, %v1095_v11 }
  0xca   :  { %2976 = vrcp.f32 %v1463_v46  ;;  %v1103_v62 = vrot.slane %v1102_v34, 4  ;;  %v359_v31 = vmax.f32 %v357_v20, %v358_v9  ;;  %v365_v33 = vrot.slane %v364_v28, 2 }
  0xcb   :  { %2978 = vpow2.f32 %v805_v55  ;;  %v2218_v10 = vand.u32 2147483647, %v2154_v57  ;;  %v2609_v60 = vsel %vm3778_vm12, %v2217_v61, 0.0  ;;  %v1098_v53 = vrot.slane %v1097_v59, 2 }
  0xcc   :  { %vm3806_vm14 = vcmp.eq.s32.totalorder %v1666_v7, %v3182_v25  ;;  %v1104_v32 = vadd.f32 %v1103_v62, %v1102_v34  ;;  %v360_v18 = vrot.slane %v359_v31, 1  ;;  %v366_v0 = vmax.f32 %v364_v28, %v365_v33 }
  0xcd   :  { %v2610_v49 = vsel %vm3782_vm13, %v2218_v10, 0.0  ;;  %vm3815_vm15 = vcmp.eq.s32.totalorder %v1670_v23, %v3182_v25  ;;  %v2354_v42 = vrot.slane %v3709_v3, %v3206_v50  ;;  %v1099_v37 = vadd.f32 %v1098_v53, %v1097_v59 }
  0xce   :  { %v2728_v8 = vcombine.low %v2609_v60, %v2610_v49  ;;  %v1105_v40 = vrot.slane %v1104_v32, 2  ;;  %v361_v36 = vmax.f32 %v359_v31, %v360_v18  ;;  %v367_v15 = vrot.slane %v366_v0, 1 }
  0xcf   :  { %v2358_v19 = vrot.slane %v3709_v3, %v3209_v54  ;;  %v1100_v27 = vrot.slane %v1099_v37, 1  ;;  %v122_v5 = vcombine.high %v3810_v6, %v3810_v6  ;;  %v1674_v29 = vrot.slane %v3629_v4, %v3224_v1 }
  0xd0   :  { %2792 = vst [vmem:[#allocation7 + $0x48] sm:$0xff] %v2728_v8  ;;  %v1106_v58 = vadd.f32 %v1105_v40, %v1104_v32  ;;  %v368_v14 = vmax.f32 %v366_v0, %v367_v15  ;;  %v369_v7 = vsel %vm172_vm0, %v3810_v6, -inf  ;;  %v2851_v41 = vsel %vm3806_vm14, 1.0, %v3135_v22  ;;  %v3862_v8 = vld [vmem:[#allocation2 + $0x78] sm:$0xff] }
  0xd1   :  { %v2852_v20 = vsel %vm3815_vm15, 1.0, %v3135_v22  ;;  %vm3835_vm1 = vcmp.eq.s32.totalorder %v2354_v42, 1  ;;  %v370_v63 = vrot.slane %v369_v7, 4  ;;  %v1101_v21 = vadd.f32 %v1100_v27, %v1099_v37 }
  0xd2   :  { %v1107_v24 = vrot.slane %v1106_v58, 1  ;;  %v698_v23 = vcombine.low %v361_v36, %v368_v14  ;;  %v376_v43 = vsel %vm172_vm0, %v122_v5, -inf  ;;  %vm3840_vm2 = vcmp.eq.s32.totalorder %v2358_v19, 1  ;;  %v3869_v36 = vld [vmem:[#allocation5 + $0x18] sm:$0xff] }
  0xd3   :  { %v1678_v56 = vrot.slane %v3629_v4, %v3240_v16  ;;  %v371_v17 = vmax.f32 %v369_v7, %v370_v63  ;;  %v377_v44 = vrot.slane %v376_v43, 4  ;;  %vm3850_vm3 = vcmp.eq.s32.totalorder %v1674_v29, %v3182_v25 }
  0xd4   :  { %v2977_v51 = vpop.eup %2976  ;;  %v1108_v34 = vadd.f32 %v1107_v24, %v1106_v58  ;;  %v762_v9 = vsub.f32 %v3751_v30, %v698_v23  ;;  %v2853_v58 = vsel %vm3850_vm3, 1.0, %v3135_v22  ;;  %v2362_v29 = vrot.slane %v3709_v3, %v3224_v1 }
  0xd5   :  { %v3846_v46 = vpop.eup %2978  ;;  %v1538_v26 = vmul.f32 %v2977_v51, %v3734_v35  ;;  %v372_v57 = vrot.slane %v371_v17, 2  ;;  %v378_v61 = vmax.f32 %v376_v43, %v377_v44  ;;  %vm3865_vm4 = vcmp.eq.s32.totalorder %v1678_v56, %v3182_v25 }
  0xd6   :  { %v889_v28 = vcombine.high %v3846_v46, %v3846_v46  ;;  %v1109_v4 = vsel %vm172_vm0, %v3846_v46, 0.0  ;;  %v1464_v31 = vcombine.low %v1101_v21, %v1108_v34  ;;  %v807_v10 = vmul.f32 1.442695, %v762_v9 }
  0xd7   :  { %v2081_v59 = vcombine.high %v1538_v26, %v1538_v26  ;;  %v2155_v62 = vsub.f32 %v2851_v41, %v1538_v26  ;;  %v1110_v35 = vrot.slane %v1109_v4, 4  ;;  %v373_v60 = vmax.f32 %v371_v17, %v372_v57 }
  0xd8   :  { %v1116_v33 = vsel %vm172_vm0, %v889_v28, 0.0  ;;  %v379_v53 = vrot.slane %v378_v61, 2  ;;  %2980 = vrcp.f32 %v1464_v31  ;;  %v123_v45 = vcombine.high %v3862_v8, %v3862_v8 }
  0xd9   :  { %v2156_v2 = vsub.f32 %v2852_v20, %v2081_v59  ;;  %v2219_v32 = vand.u32 2147483647, %v2155_v62  ;;  %v1111_v30 = vadd.f32 %v1110_v35, %v1109_v4  ;;  %v1117_v18 = vrot.slane %v1116_v33, 4 }
  0xda   :  { %2982 = vpow2.f32 %v807_v10  ;;  %v374_v0 = vrot.slane %v373_v60, 1  ;;  %v380_v49 = vmax.f32 %v378_v61, %v379_v53  ;;  %v2366_v63 = vrot.slane %v3709_v3, %v3240_v16 }
  0xdb   :  { %v2220_v12 = vand.u32 2147483647, %v2156_v2  ;;  %v2611_v42 = vsel %vm3835_vm1, %v2219_v32, 0.0  ;;  %v1112_v37 = vrot.slane %v1111_v30, 2  ;;  %v1118_v15 = vadd.f32 %v1117_v18, %v1116_v33 }
  0xdc   :  { %v375_v19 = vmax.f32 %v373_v60, %v374_v0  ;;  %v381_v27 = vrot.slane %v380_v49, 1  ;;  %v1682_v24 = vrot.slane %v3869_v36, %v3190_v38  ;;  %v383_v23 = vsel %vm172_vm0, %v3862_v8, -inf }
  0xdd   :  { %v2612_v5 = vsel %vm3840_vm2, %v2220_v12, 0.0  ;;  %v1113_v14 = vadd.f32 %v1112_v37, %v1111_v30  ;;  %v1119_v41 = vrot.slane %v1118_v15, 2  ;;  %v384_v11 = vrot.slane %v383_v23, 4 }
  0xde   :  { %v2729_v7 = vcombine.low %v2611_v42, %v2612_v5  ;;  %v382_v20 = vmax.f32 %v380_v49, %v381_v27  ;;  %v390_v56 = vsel %vm172_vm0, %v123_v45, -inf  ;;  %v2854_v17 = vsel %vm3865_vm4, 1.0, %v3135_v22 }
  0xdf   :  { %v1114_v21 = vrot.slane %v1113_v14, 1  ;;  %v1120_v43 = vadd.f32 %v1119_v41, %v1118_v15  ;;  %v1686_v3 = vrot.slane %v3869_v36, %v3193_v39  ;;  %vm2034_vm5 = vcmp.ge.s32.totalorder %v3869_v36, 0 }
  0xe0   :  { %2793 = vst [vmem:[#allocation7 + $0x50] sm:$0xff] %v2729_v7  ;;  %v699_v51 = vcombine.low %v375_v19, %v382_v20  ;;  %v391_v44 = vrot.slane %v390_v56, 4  ;;  %v385_v9 = vmax.f32 %v383_v23, %v384_v11  ;;  %vm3894_vm6 = vcmp.eq.s32.totalorder %v2362_v29, 1  ;;  %v3925_v19 = vld [vmem:[#allocation2 + $0x80] sm:$0xff] }
  0xe1   :  { %v1115_v26 = vadd.f32 %v1114_v21, %v1113_v14  ;;  %v1121_v34 = vrot.slane %v1120_v43, 1  ;;  %vm3898_vm7 = vcmp.eq.s32.totalorder %v2366_v63, 1  ;;  %vm3903_vm8 = vcmp.eq.s32.totalorder %v1682_v24, %v3182_v25 }
  0xe2   :  { %v763_v55 = vsub.f32 %v3810_v6, %v699_v51  ;;  %v2981_v28 = vpop.eup %2980  ;;  %v392_v59 = vmax.f32 %v390_v56, %v391_v44  ;;  %v386_v33 = vrot.slane %v385_v9, 2  ;;  %vm3911_vm9 = vcmp.eq.s32.totalorder %v1686_v3, %v3182_v25 }
  0xe3   :  { %v1540_v6 = vmul.f32 %v2981_v28, %v3790_v52  ;;  %v1122_v31 = vadd.f32 %v1121_v34, %v1120_v43  ;;  %v3918_v60 = vsel %vm2034_vm5, 1, %v3134_v13  ;;  %v2855_v27 = vsel %vm3903_vm8, 1.0, %v3135_v22 }
  0xe4   :  { %v3907_v62 = vpop.eup %2982  ;;  %v809_v35 = vmul.f32 1.442695, %v763_v55  ;;  %v393_v52 = vrot.slane %v392_v59, 2  ;;  %v387_v12 = vmax.f32 %v385_v9, %v386_v33  ;;  %v2370_v41 = vrot.slane %v3918_v60, %v3190_v38 }
  0xe5   :  { %v890_v53 = vcombine.high %v3907_v62, %v3907_v62  ;;  %v1123_v2 = vsel %vm172_vm0, %v3907_v62, 0.0  ;;  %v2082_v32 = vcombine.high %v1540_v6, %v1540_v6  ;;  %v2157_v30 = vsub.f32 %v2853_v58, %v1540_v6 }
  0xe6   :  { %v1465_v18 = vcombine.low %v1115_v26, %v1122_v31  ;;  %v1124_v0 = vrot.slane %v1123_v2, 4  ;;  %2984 = vpow2.f32 %v809_v35  ;;  %v394_v42 = vmax.f32 %v392_v59, %v393_v52 }
  0xe7   :  { %v1130_v49 = vsel %vm172_vm0, %v890_v53, 0.0  ;;  %v2158_v37 = vsub.f32 %v2854_v17, %v2082_v32  ;;  %v2221_v40 = vand.u32 2147483647, %v2157_v30  ;;  %v388_v29 = vrot.slane %v387_v12, 1 }
  0xe8   :  { %2986 = vrcp.f32 %v1465_v18  ;;  %v1125_v15 = vadd.f32 %v1124_v0, %v1123_v2  ;;  %v1131_v5 = vrot.slane %v1130_v49, 4  ;;  %v395_v58 = vrot.slane %v394_v42, 1 }
  0xe9   :  { %v2222_v14 = vand.u32 2147483647, %v2158_v37  ;;  %v2613_v7 = vsel %vm3894_vm6, %v2221_v40, 0.0  ;;  %v389_v63 = vmax.f32 %v387_v12, %v388_v29  ;;  %v124_v24 = vcombine.high %v3925_v19, %v3925_v19 }
  0xea   :  { %v1126_v20 = vrot.slane %v1125_v15, 2  ;;  %v1132_v45 = vadd.f32 %v1131_v5, %v1130_v49  ;;  %v396_v21 = vmax.f32 %v394_v42, %v395_v58  ;;  %v1690_v51 = vrot.slane %v3869_v36, %v3200_v47 }
  0xeb   :  { %v2614_v23 = vsel %vm3898_vm7, %v2222_v14, 0.0  ;;  %v397_v11 = vsel %vm172_vm0, %v3925_v19, -inf  ;;  %v2374_v26 = vrot.slane %v3918_v60, %v3193_v39  ;;  %v1694_v55 = vrot.slane %v3869_v36, %v3203_v48 }
  0xec   :  { %v1127_v43 = vadd.f32 %v1126_v20, %v1125_v15  ;;  %v2730_v56 = vcombine.low %v2613_v7, %v2614_v23  ;;  %v1133_v17 = vrot.slane %v1132_v45, 2  ;;  %v700_v3 = vcombine.low %v389_v63, %v396_v21  ;;  %v3975_v21 = vld [vmem:[#allocation2 + $0x88] sm:$0xff] }
  0xed   :  { %v398_v44 = vrot.slane %v397_v11, 4  ;;  %v404_v9 = vsel %vm172_vm0, %v124_v24, -inf  ;;  %v2856_v59 = vsel %vm3911_vm9, 1.0, %v3135_v22  ;;  %vm3951_vm10 = vcmp.eq.s32.totalorder %v2370_v41, 1 }
  0xee   :  { %v1128_v34 = vrot.slane %v1127_v43, 1  ;;  %2794 = vst [vmem:[#allocation7 + $0x58] sm:$0xff] %v2730_v56  ;;  %v1134_v28 = vadd.f32 %v1133_v17, %v1132_v45  ;;  %v764_v4 = vsub.f32 %v3862_v8, %v700_v3  ;;  %v405_v61 = vrot.slane %v404_v9, 4 }
  0xef   :  { %v399_v57 = vmax.f32 %v397_v11, %v398_v44  ;;  %vm1865_vm11 = vcmp.eq.s32.totalorder %v1690_v51, %v3182_v25  ;;  %vm3958_vm12 = vcmp.eq.s32.totalorder %v2374_v26, 1  ;;  %vm1866_vm13 = vcmp.eq.s32.totalorder %v1694_v55, %v3182_v25 }
  0xf0   :  { %v1129_v31 = vadd.f32 %v1128_v34, %v1127_v43  ;;  %v3956_v35 = vpop.eup %2984  ;;  %v1135_v33 = vrot.slane %v1134_v28, 1  ;;  %v811_v53 = vmul.f32 1.442695, %v764_v4  ;;  %v406_v52 = vmax.f32 %v404_v9, %v405_v61 }
  0xf1   :  { %v400_v2 = vrot.slane %v399_v57, 2  ;;  %v891_v10 = vcombine.high %v3956_v35, %v3956_v35  ;;  %v1137_v30 = vsel %vm172_vm0, %v3956_v35, 0.0  ;;  %v3969_v12 = vsel %vm1865_vm11, 1.0, %v3135_v22 }
  0xf2   :  { %v2987_v8 = vpop.eup %2986  ;;  %v1136_v0 = vadd.f32 %v1135_v33, %v1134_v28  ;;  %v1138_v49 = vrot.slane %v1137_v30, 4  ;;  %2988 = vpow2.f32 %v811_v53  ;;  %v407_v40 = vrot.slane %v406_v52, 2 }
  0xf3   :  { %v1542_v18 = vmul.f32 %v2987_v8, %v3846_v46  ;;  %v1144_v42 = vsel %vm172_vm0, %v891_v10, 0.0  ;;  %v401_v37 = vmax.f32 %v399_v57, %v400_v2  ;;  %v3973_v14 = vsel %vm1866_vm13, 1.0, %v3135_v22 }
  0xf4   :  { %v1466_v29 = vcombine.low %v1129_v31, %v1136_v0  ;;  %v1139_v58 = vadd.f32 %v1138_v49, %v1137_v30  ;;  %v1145_v7 = vrot.slane %v1144_v42, 4  ;;  %v408_v46 = vmax.f32 %v406_v52, %v407_v40 }
  0xf5   :  { %v2083_v15 = vcombine.high %v1542_v18, %v1542_v18  ;;  %v2159_v5 = vsub.f32 %v2855_v27, %v1542_v18  ;;  %v402_v41 = vrot.slane %v401_v37, 1  ;;  %v2378_v24 = vrot.slane %v3918_v60, %v3200_v47 }
  0xf6   :  { %2990 = vrcp.f32 %v1466_v29  ;;  %v1140_v63 = vrot.slane %v1139_v58, 2  ;;  %v1146_v23 = vadd.f32 %v1145_v7, %v1144_v42  ;;  %v409_v27 = vrot.slane %v408_v46, 1 }
  0xf7   :  { %v2160_v20 = vsub.f32 %v2856_v59, %v2083_v15  ;;  %v2223_v45 = vand.u32 2147483647, %v2159_v5  ;;  %v403_v43 = vmax.f32 %v401_v37, %v402_v41  ;;  %v2382_v56 = vrot.slane %v3918_v60, %v3203_v48 }
  0xf8   :  { %v1141_v17 = vadd.f32 %v1140_v63, %v1139_v58  ;;  %v1147_v3 = vrot.slane %v1146_v23, 2  ;;  %v410_v44 = vmax.f32 %v408_v46, %v409_v27  ;;  %v125_v26 = vcombine.high %v3975_v21, %v3975_v21 }
  0xf9   :  { %v2224_v51 = vand.u32 2147483647, %v2160_v20  ;;  %v2615_v11 = vsel %vm3951_vm10, %v2223_v45, 0.0  ;;  %v411_v34 = vsel %vm172_vm0, %v3975_v21, -inf  ;;  %v1698_v28 = vrot.slane %v3869_v36, %v3206_v50 }
  0xfa   :  { %v1142_v9 = vrot.slane %v1141_v17, 1  ;;  %v412_v4 = vrot.slane %v411_v34, 4  ;;  %v1148_v61 = vadd.f32 %v1147_v3, %v1146_v23  ;;  %v701_v59 = vcombine.low %v403_v43, %v410_v44 }
  0xfb   :  { %v2616_v55 = vsel %vm3958_vm12, %v2224_v51, 0.0  ;;  %v418_v6 = vsel %vm172_vm0, %v125_v26, -inf  ;;  %vm3994_vm14 = vcmp.eq.s32.totalorder %v2378_v24, 1  ;;  %vm4003_vm15 = vcmp.eq.s32.totalorder %v2382_v56, 1 }
  0xfc   :  { %v2731_v57 = vcombine.low %v2615_v11, %v2616_v55  ;;  %v3992_v31 = vpop.eup %2988  ;;  %v1143_v53 = vadd.f32 %v1142_v9, %v1141_v17  ;;  %v413_v2 = vmax.f32 %v411_v34, %v412_v4  ;;  %v419_v52 = vrot.slane %v418_v6, 4 }
  0xfd   :  { %v1149_v8 = vrot.slane %v1148_v61, 1  ;;  %v892_v32 = vcombine.high %v3992_v31, %v3992_v31  ;;  %v1151_v10 = vsel %vm172_vm0, %v3992_v31, 0.0  ;;  %v765_v30 = vsub.f32 %v3925_v19, %v701_v59 }
  0xfe   :  { %2795 = vst [vmem:[#allocation7 + $0x60] sm:$0xff] %v2731_v57  ;;  %v1152_v0 = vrot.slane %v1151_v10, 4  ;;  %v414_v49 = vrot.slane %v413_v2, 2  ;;  %v420_v42 = vmax.f32 %v418_v6, %v419_v52  ;;  %v1702_v40 = vrot.slane %v3869_v36, %v3209_v54 }
  0xff   :  { %v1150_v37 = vadd.f32 %v1149_v8, %v1148_v61  ;;  %v1158_v15 = vsel %vm172_vm0, %v892_v32, 0.0  ;;  %v813_v5 = vmul.f32 1.442695, %v765_v30  ;;  %vm4012_vm1 = vcmp.eq.s32.totalorder %v1698_v28, %v3182_v25 }
 0x100   :  { %v2991_v29 = vpop.eup %2990  ;;  %v1153_v58 = vadd.f32 %v1152_v0, %v1151_v10  ;;  %v1159_v7 = vrot.slane %v1158_v15, 4  ;;  %v415_v41 = vmax.f32 %v413_v2, %v414_v49  ;;  %v421_v46 = vrot.slane %v420_v42, 2 }
 0x101   :  { %v1544_v19 = vmul.f32 %v2991_v29, %v3907_v62  ;;  %v1467_v20 = vcombine.low %v1143_v53, %v1150_v37  ;;  %2992 = vpow2.f32 %v813_v5  ;;  %vm4018_vm2 = vcmp.eq.s32.totalorder %v1702_v40, %v3182_v25  ;;  %v4022_v62 = vld [vmem:[#allocation2 + $0x90] sm:$0xff] }
 0x102   :  { %v1154_v63 = vrot.slane %v1153_v58, 2  ;;  %v1160_v24 = vadd.f32 %v1159_v7, %v1158_v15  ;;  %v416_v23 = vrot.slane %v415_v41, 1  ;;  %v422_v43 = vmax.f32 %v420_v42, %v421_v46 }
 0x103   :  { %v2084_v27 = vcombine.high %v1544_v19, %v1544_v19  ;;  %v2161_v51 = vsub.f32 %v3969_v12, %v1544_v19  ;;  %2994 = vrcp.f32 %v1467_v20  ;;  %v2859_v55 = vsel %vm4012_vm1, 1.0, %v3135_v22 }
 0x104   :  { %v1155_v56 = vadd.f32 %v1154_v63, %v1153_v58  ;;  %v1161_v17 = vrot.slane %v1160_v24, 2  ;;  %v417_v3 = vmax.f32 %v415_v41, %v416_v23  ;;  %v423_v44 = vrot.slane %v422_v43, 1 }
 0x105   :  { %v2162_v26 = vsub.f32 %v3973_v14, %v2084_v27  ;;  %v2225_v34 = vand.u32 2147483647, %v2161_v51  ;;  %v2386_v12 = vrot.slane %v3918_v60, %v3206_v50  ;;  %v126_v57 = vcombine.high %v4022_v62, %v4022_v62 }
 0x106   :  { %v1156_v9 = vrot.slane %v1155_v56, 1  ;;  %v1162_v28 = vadd.f32 %v1161_v17, %v1160_v24  ;;  %v424_v4 = vmax.f32 %v422_v43, %v423_v44  ;;  %v2860_v14 = vsel %vm4018_vm2, 1.0, %v3135_v22 }
 0x107   :  { %v2226_v61 = vand.u32 2147483647, %v2162_v26  ;;  %v2617_v59 = vsel %vm3994_vm14, %v2225_v34, 0.0  ;;  %v1706_v6 = vrot.slane %v3869_v36, %v3224_v1  ;;  %v425_v8 = vsel %vm172_vm0, %v4022_v62, -inf  ;;  %v4072_v26 = vld [vmem:[#allocation2 + $0x98] sm:$0xff] }
 0x108   :  { %v1157_v53 = vadd.f32 %v1156_v9, %v1155_v56  ;;  %v1163_v2 = vrot.slane %v1162_v28, 1  ;;  %v702_v52 = vcombine.low %v417_v3, %v424_v4  ;;  %v2390_v33 = vrot.slane %v3918_v60, %v3209_v54 }
 0x109   :  { %v2618_v32 = vsel %vm4003_vm15, %v2226_v61, 0.0  ;;  %v426_v10 = vrot.slane %v425_v8, 4  ;;  %v432_v30 = vsel %vm172_vm0, %v126_v57, -inf  ;;  %vm4049_vm3 = vcmp.eq.s32.totalorder %v2386_v12, 1 }
 0x10a   :  { %v2732_v0 = vcombine.low %v2617_v59, %v2618_v32  ;;  %v1164_v49 = vadd.f32 %v1163_v2, %v1162_v28  ;;  %v766_v42 = vsub.f32 %v3975_v21, %v702_v52  ;;  %v433_v37 = vrot.slane %v432_v30, 4  ;;  %v4085_v52 = vld [vmem:[#allocation5 + $0x20] sm:$0xff] }
 0x10b   :  { %v4047_v40 = vpop.eup %2992  ;;  %v1710_v18 = vrot.slane %v3869_v36, %v3240_v16  ;;  %vm1869_vm4 = vcmp.eq.s32.totalorder %v1706_v6, %v3182_v25  ;;  %v427_v5 = vmax.f32 %v425_v8, %v426_v10  ;;  %vm4060_vm5 = vcmp.eq.s32.totalorder %v2390_v33, 1 }
 0x10c   :  { %2796 = vst [vmem:[#allocation7 + $0x68] sm:$0xff] %v2732_v0  ;;  %v1468_v29 = vcombine.low %v1157_v53, %v1164_v49  ;;  %v893_v58 = vcombine.high %v4047_v40, %v4047_v40  ;;  %v1165_v21 = vsel %vm172_vm0, %v4047_v40, 0.0  ;;  %v815_v7 = vmul.f32 1.442695, %v766_v42 }
 0x10d   :  { %v2995_v41 = vpop.eup %2994  ;;  %v1166_v19 = vrot.slane %v1165_v21, 4  ;;  %v428_v20 = vrot.slane %v427_v5, 2  ;;  %v434_v36 = vmax.f32 %v432_v30, %v433_v37  ;;  %v4066_v63 = vsel %vm1869_vm4, 1.0, %v3135_v22 }
 0x10e   :  { %v1546_v45 = vmul.f32 %v2995_v41, %v3956_v35  ;;  %2996 = vrcp.f32 %v1468_v29  ;;  %v1172_v24 = vsel %vm172_vm0, %v893_v58, 0.0  ;;  %vm1870_vm6 = vcmp.eq.s32.totalorder %v1710_v18, %v3182_v25 }
 0x10f   :  { %v1167_v23 = vadd.f32 %v1166_v19, %v1165_v21  ;;  %v1173_v43 = vrot.slane %v1172_v24, 4  ;;  %2998 = vpow2.f32 %v815_v7  ;;  %v429_v27 = vmax.f32 %v427_v5, %v428_v20 }
 0x110   :  { %v2085_v51 = vcombine.high %v1546_v45, %v1546_v45  ;;  %v2163_v11 = vsub.f32 %v2859_v55, %v1546_v45  ;;  %v435_v56 = vrot.slane %v434_v36, 2  ;;  %v2394_v17 = vrot.slane %v3918_v60, %v3224_v1 }
 0x111   :  { %v1168_v3 = vrot.slane %v1167_v23, 2  ;;  %v1174_v35 = vadd.f32 %v1173_v43, %v1172_v24  ;;  %v430_v44 = vrot.slane %v429_v27, 1  ;;  %v2398_v9 = vrot.slane %v3918_v60, %v3240_v16 }
 0x112   :  { %v2164_v34 = vsub.f32 %v2860_v14, %v2085_v51  ;;  %v2227_v12 = vand.u32 2147483647, %v2163_v11  ;;  %v436_v28 = vmax.f32 %v434_v36, %v435_v56  ;;  %v2862_v4 = vsel %vm1870_vm6, 1.0, %v3135_v22 }
 0x113   :  { %v1169_v55 = vadd.f32 %v1168_v3, %v1167_v23  ;;  %v1175_v57 = vrot.slane %v1174_v35, 2  ;;  %v431_v61 = vmax.f32 %v429_v27, %v430_v44  ;;  %v127_v2 = vcombine.high %v4072_v26, %v4072_v26 }
 0x114   :  { %v2228_v59 = vand.u32 2147483647, %v2164_v34  ;;  %v2619_v6 = vsel %vm4049_vm3, %v2227_v12, 0.0  ;;  %v437_v53 = vrot.slane %v436_v28, 1  ;;  %vm4081_vm7 = vcmp.eq.s32.totalorder %v2394_v17, 1 }
 0x115   :  { %v1170_v60 = vrot.slane %v1169_v55, 1  ;;  %v1176_v8 = vadd.f32 %v1175_v57, %v1174_v35  ;;  %v439_v32 = vsel %vm172_vm0, %v4072_v26, -inf  ;;  %vm4091_vm8 = vcmp.eq.s32.totalorder %v2398_v9, 1  ;;  %v4113_v57 = vld [vmem:[#allocation2 + $0xa0] sm:$0xff] }
 0x116   :  { %v2620_v33 = vsel %vm4060_vm5, %v2228_v59, 0.0  ;;  %v438_v30 = vmax.f32 %v436_v28, %v437_v53  ;;  %v440_v0 = vrot.slane %v439_v32, 4  ;;  %v446_v49 = vsel %vm172_vm0, %v127_v2, -inf }
 0x117   :  { %v2733_v42 = vcombine.low %v2619_v6, %v2620_v33  ;;  %v1171_v37 = vadd.f32 %v1170_v60, %v1169_v55  ;;  %v1177_v15 = vrot.slane %v1176_v8, 1  ;;  %v447_v18 = vrot.slane %v446_v49, 4 }
 0x118   :  { %v2997_v5 = vpop.eup %2996  ;;  %v1714_v29 = vrot.slane %v4085_v52, %v3190_v38  ;;  %v1718_v58 = vrot.slane %v4085_v52, %v3193_v39  ;;  %v703_v21 = vcombine.low %v431_v61, %v438_v30  ;;  %v441_v7 = vmax.f32 %v439_v32, %v440_v0 }
 0x119   :  { %v4100_v41 = vpop.eup %2998  ;;  %2797 = vst [vmem:[#allocation7 + $0x70] sm:$0xff] %v2733_v42  ;;  %v1548_v46 = vmul.f32 %v2997_v5, %v3992_v31  ;;  %v1178_v19 = vadd.f32 %v1177_v15, %v1176_v8  ;;  %vm2035_vm9 = vcmp.ge.s32.totalorder %v4085_v52, 0  ;;  %v448_v20 = vmax.f32 %v446_v49, %v447_v18 }
 0x11a   :  { %v894_v36 = vcombine.high %v4100_v41, %v4100_v41  ;;  %v1179_v45 = vsel %vm172_vm0, %v4100_v41, 0.0  ;;  %v767_v24 = vsub.f32 %v4022_v62, %v703_v21  ;;  %v442_v23 = vrot.slane %v441_v7, 2 }
 0x11b   :  { %v2086_v43 = vcombine.high %v1548_v46, %v1548_v46  ;;  %v2165_v27 = vsub.f32 %v4066_v63, %v1548_v46  ;;  %v1469_v51 = vcombine.low %v1171_v37, %v1178_v19  ;;  %v1180_v11 = vrot.slane %v1179_v45, 4 }
 0x11c   :  { %v1186_v31 = vsel %vm172_vm0, %v894_v36, 0.0  ;;  %v817_v56 = vmul.f32 1.442695, %v767_v24  ;;  %v443_v17 = vmax.f32 %v441_v7, %v442_v23  ;;  %v449_v3 = vrot.slane %v448_v20, 2 }
 0x11d   :  { %v2166_v35 = vsub.f32 %v2862_v4, %v2086_v43  ;;  %v2229_v44 = vand.u32 2147483647, %v2165_v27  ;;  %3000 = vrcp.f32 %v1469_v51  ;;  %v1181_v34 = vadd.f32 %v1180_v11, %v1179_v45 }
 0x11e   :  { %v1187_v12 = vrot.slane %v1186_v31, 4  ;;  %3002 = vpow2.f32 %v817_v56  ;;  %v444_v9 = vrot.slane %v443_v17, 1  ;;  %v450_v28 = vmax.f32 %v448_v20, %v449_v3 }
 0x11f   :  { %v2230_v62 = vand.u32 2147483647, %v2166_v35  ;;  %v2621_v55 = vsel %vm4081_vm7, %v2229_v44, 0.0  ;;  %v1182_v63 = vrot.slane %v1181_v34, 2  ;;  %v4118_v61 = vsel %vm2035_vm9, 1, %v3134_v13 }
 0x120   :  { %v1188_v4 = vadd.f32 %v1187_v12, %v1186_v31  ;;  %v445_v59 = vmax.f32 %v443_v17, %v444_v9  ;;  %v451_v6 = vrot.slane %v450_v28, 1  ;;  %vm4123_vm10 = vcmp.eq.s32.totalorder %v1714_v29, %v3182_v25 }
 0x121   :  { %v2622_v53 = vsel %vm4091_vm8, %v2230_v62, 0.0  ;;  %vm4128_vm11 = vcmp.eq.s32.totalorder %v1718_v58, %v3182_v25  ;;  %v1183_v60 = vadd.f32 %v1182_v63, %v1181_v34  ;;  %v128_v30 = vcombine.high %v4113_v57, %v4113_v57 }
 0x122   :  { %v2734_v8 = vcombine.low %v2621_v55, %v2622_v53  ;;  %v1189_v32 = vrot.slane %v1188_v4, 2  ;;  %v452_v33 = vmax.f32 %v450_v28, %v451_v6  ;;  %v2402_v10 = vrot.slane %v4118_v61, %v3190_v38 }
 0x123   :  { %v2406_v0 = vrot.slane %v4118_v61, %v3193_v39  ;;  %v1184_v49 = vrot.slane %v1183_v60, 1  ;;  %v453_v42 = vsel %vm172_vm0, %v4113_v57, -inf  ;;  %v460_v5 = vsel %vm172_vm0, %v128_v30, -inf }
 0x124   :  { %2798 = vst [vmem:[#allocation7 + $0x78] sm:$0xff] %v2734_v8  ;;  %v1190_v37 = vadd.f32 %v1189_v32, %v1188_v4  ;;  %v704_v15 = vcombine.low %v445_v59, %v452_v33  ;;  %v454_v18 = vrot.slane %v453_v42, 4  ;;  %v2863_v29 = vsel %vm4123_vm10, 1.0, %v3135_v22 }
 0x125   :  { %v2864_v58 = vsel %vm4128_vm11, 1.0, %v3135_v22  ;;  %v1722_v21 = vrot.slane %v4085_v52, %v3200_v47  ;;  %v461_v7 = vrot.slane %v460_v5, 4  ;;  %v1185_v46 = vadd.f32 %v1184_v49, %v1183_v60  ;;  %v4178_v60 = vld [vmem:[#allocation2 + $0xa8] sm:$0xff] }
 0x126   :  { %v1191_v19 = vrot.slane %v1190_v37, 1  ;;  %v768_v20 = vsub.f32 %v4072_v26, %v704_v15  ;;  %v455_v36 = vmax.f32 %v453_v42, %v454_v18  ;;  %vm4150_vm12 = vcmp.eq.s32.totalorder %v2402_v10, 1 }
 0x127   :  { %v3001_v45 = vpop.eup %3000  ;;  %vm4154_vm13 = vcmp.eq.s32.totalorder %v2406_v0, 1  ;;  %v1726_v43 = vrot.slane %v4085_v52, %v3203_v48  ;;  %v462_v27 = vmax.f32 %v460_v5, %v461_v7  ;;  %vm4164_vm14 = vcmp.eq.s32.totalorder %v1722_v21, %v3182_v25 }
 0x128   :  { %v4160_v51 = vpop.eup %3002  ;;  %v1550_v11 = vmul.f32 %v3001_v45, %v4047_v40  ;;  %v1192_v31 = vadd.f32 %v1191_v19, %v1190_v37  ;;  %v819_v26 = vmul.f32 1.442695, %v768_v20  ;;  %v456_v56 = vrot.slane %v455_v36, 2 }
 0x129   :  { %v895_v3 = vcombine.high %v4160_v51, %v4160_v51  ;;  %v1193_v35 = vsel %vm172_vm0, %v4160_v51, 0.0  ;;  %v463_v44 = vrot.slane %v462_v27, 2  ;;  %vm4174_vm15 = vcmp.eq.s32.totalorder %v1726_v43, %v3182_v25 }
 0x12a   :  { %v2087_v34 = vcombine.high %v1550_v11, %v1550_v11  ;;  %v2167_v12 = vsub.f32 %v2863_v29, %v1550_v11  ;;  %v1470_v9 = vcombine.low %v1185_v46, %v1192_v31  ;;  %v1194_v28 = vrot.slane %v1193_v35, 4 }
 0x12b   :  { %v1200_v40 = vsel %vm172_vm0, %v895_v3, 0.0  ;;  %3004 = vpow2.f32 %v819_v26  ;;  %v457_v62 = vmax.f32 %v455_v36, %v456_v56  ;;  %v464_v55 = vmax.f32 %v462_v27, %v463_v44 }
 0x12c   :  { %v2168_v63 = vsub.f32 %v2864_v58, %v2087_v34  ;;  %v2231_v4 = vand.u32 2147483647, %v2167_v12  ;;  %3006 = vrcp.f32 %v1470_v9  ;;  %v1195_v59 = vadd.f32 %v1194_v28, %v1193_v35 }
 0x12d   :  { %v1201_v53 = vrot.slane %v1200_v40, 4  ;;  %v458_v2 = vrot.slane %v457_v62, 1  ;;  %v465_v14 = vrot.slane %v464_v55, 1  ;;  %v2865_v33 = vsel %vm4164_vm14, 1.0, %v3135_v22 }
 0x12e   :  { %v2232_v8 = vand.u32 2147483647, %v2168_v63  ;;  %v2623_v32 = vsel %vm4150_vm12, %v2231_v4, 0.0  ;;  %v1196_v30 = vrot.slane %v1195_v59, 2  ;;  %v2410_v10 = vrot.slane %v4118_v61, %v3200_v47 }
 0x12f   :  { %v1202_v0 = vadd.f32 %v1201_v53, %v1200_v40  ;;  %v459_v49 = vmax.f32 %v457_v62, %v458_v2  ;;  %v466_v42 = vmax.f32 %v464_v55, %v465_v14  ;;  %v2414_v15 = vrot.slane %v4118_v61, %v3203_v48 }
 0x130   :  { %v2624_v37 = vsel %vm4154_vm13, %v2232_v8, 0.0  ;;  %v1197_v18 = vadd.f32 %v1196_v30, %v1195_v59  ;;  %v129_v5 = vcombine.high %v4178_v60, %v4178_v60  ;;  %v2866_v58 = vsel %vm4174_vm15, 1.0, %v3135_v22 }
 0x131   :  { %v2735_v29 = vcombine.low %v2623_v32, %v2624_v37  ;;  %v1203_v21 = vrot.slane %v1202_v0, 2  ;;  %v705_v7 = vcombine.low %v459_v49, %v466_v42  ;;  %v1730_v19 = vrot.slane %v4085_v52, %v3206_v50  ;;  %v4237_v37 = vld [vmem:[#allocation2 + $0xb0] sm:$0xff] }
 0x132   :  { %v1198_v46 = vrot.slane %v1197_v18, 1  ;;  %v467_v20 = vsel %vm172_vm0, %v4178_v60, -inf  ;;  %v474_v36 = vsel %vm172_vm0, %v129_v5, -inf  ;;  %vm4202_vm1 = vcmp.eq.s32.totalorder %v2410_v10, 1 }
 0x133   :  { %2799 = vst [vmem:[#allocation7 + $0x80] sm:$0xff] %v2735_v29  ;;  %v1204_v45 = vadd.f32 %v1203_v21, %v1202_v0  ;;  %v769_v24 = vsub.f32 %v4113_v57, %v705_v7  ;;  %v468_v23 = vrot.slane %v467_v20, 4  ;;  %v475_v43 = vrot.slane %v474_v36, 4 }
 0x134   :  { %vm4206_vm2 = vcmp.eq.s32.totalorder %v2414_v15, 1  ;;  %v1199_v31 = vadd.f32 %v1198_v46, %v1197_v18  ;;  %v1734_v26 = vrot.slane %v4085_v52, %v3209_v54  ;;  %vm4215_vm3 = vcmp.eq.s32.totalorder %v1730_v19, %v3182_v25 }
 0x135   :  { %v4212_v56 = vpop.eup %3004  ;;  %v1205_v17 = vrot.slane %v1204_v45, 1  ;;  %v821_v3 = vmul.f32 1.442695, %v769_v24  ;;  %v469_v35 = vmax.f32 %v467_v20, %v468_v23  ;;  %v476_v57 = vmax.f32 %v474_v36, %v475_v43 }
 0x136   :  { %v3007_v44 = vpop.eup %3006  ;;  %v2418_v12 = vrot.slane %v4118_v61, %v3206_v50  ;;  %v896_v9 = vcombine.high %v4212_v56, %v4212_v56  ;;  %v1207_v28 = vsel %vm172_vm0, %v4212_v56, 0.0  ;;  %vm4227_vm4 = vcmp.eq.s32.totalorder %v1734_v26, %v3182_v25 }
 0x137   :  { %v1552_v40 = vmul.f32 %v3007_v44, %v4100_v41  ;;  %v1206_v62 = vadd.f32 %v1205_v17, %v1204_v45  ;;  %v1208_v55 = vrot.slane %v1207_v28, 4  ;;  %3008 = vpow2.f32 %v821_v3 }
 0x138   :  { %v1214_v4 = vsel %vm172_vm0, %v896_v9, 0.0  ;;  %v470_v59 = vrot.slane %v469_v35, 2  ;;  %v477_v6 = vrot.slane %v476_v57, 2  ;;  %v4235_v41 = vsel %vm4215_vm3, 1.0, %v3135_v22 }
 0x139   :  { %v2088_v53 = vcombine.high %v1552_v40, %v1552_v40  ;;  %v2169_v2 = vsub.f32 %v2865_v33, %v1552_v40  ;;  %v1471_v14 = vcombine.low %v1199_v31, %v1206_v62  ;;  %v1209_v8 = vadd.f32 %v1208_v55, %v1207_v28 }
 0x13a   :  { %v1215_v32 = vrot.slane %v1214_v4, 4  ;;  %v471_v30 = vmax.f32 %v469_v35, %v470_v59  ;;  %v478_v10 = vmax.f32 %v476_v57, %v477_v6  ;;  %v2868_v33 = vsel %vm4227_vm4, 1.0, %v3135_v22 }
 0x13b   :  { %v2170_v0 = vsub.f32 %v2866_v58, %v2088_v53  ;;  %v2233_v49 = vand.u32 2147483647, %v2169_v2  ;;  %3010 = vrcp.f32 %v1471_v14  ;;  %v1210_v42 = vrot.slane %v1209_v8, 2 }
 0x13c   :  { %v1216_v15 = vadd.f32 %v1215_v32, %v1214_v4  ;;  %v472_v18 = vrot.slane %v471_v30, 1  ;;  %v479_v5 = vrot.slane %v478_v10, 1  ;;  %v2422_v7 = vrot.slane %v4118_v61, %v3209_v54 }
 0x13d   :  { %v2234_v29 = vand.u32 2147483647, %v2170_v0  ;;  %v2625_v21 = vsel %vm4202_vm1, %v2233_v49, 0.0  ;;  %v1211_v58 = vadd.f32 %v1210_v42, %v1209_v8  ;;  %v130_v36 = vcombine.high %v4237_v37, %v4237_v37 }
 0x13e   :  { %v1217_v46 = vrot.slane %v1216_v15, 2  ;;  %v473_v19 = vmax.f32 %v471_v30, %v472_v18  ;;  %v480_v20 = vmax.f32 %v478_v10, %v479_v5  ;;  %v1738_v23 = vrot.slane %v4085_v52, %v3224_v1 }
 0x13f   :  { %v2626_v45 = vsel %vm4206_vm2, %v2234_v29, 0.0  ;;  %v1212_v24 = vrot.slane %v1211_v58, 1  ;;  %v481_v43 = vsel %vm172_vm0, %v4237_v37, -inf  ;;  %vm4256_vm5 = vcmp.eq.s32.totalorder %v2418_v12, 1 }
 0x140   :  { %v2736_v27 = vcombine.low %v2625_v21, %v2626_v45  ;;  %v1218_v31 = vadd.f32 %v1217_v46, %v1216_v15  ;;  %v706_v26 = vcombine.low %v473_v19, %v480_v20  ;;  %v482_v17 = vrot.slane %v481_v43, 4  ;;  %v4290_v46 = vld [vmem:[#allocation2 + $0xb8] sm:$0xff]  ;;  %v4297_v45 = vld [vmem:[#allocation5 + $0x28] sm:$0xff] }
 0x141   :  { %v4254_v3 = vpop.eup %3008  ;;  %v1213_v57 = vadd.f32 %v1212_v24, %v1211_v58  ;;  %v1742_v11 = vrot.slane %v4085_v52, %v3240_v16  ;;  %v488_v44 = vsel %vm172_vm0, %v130_v36, -inf  ;;  %vm4268_vm6 = vcmp.eq.s32.totalorder %v2422_v7, 1 }
 0x142   :  { %2800 = vst [vmem:[#allocation7 + $0x88] sm:$0xff] %v2736_v27  ;;  %v1219_v34 = vrot.slane %v1218_v31, 1  ;;  %v897_v9 = vcombine.high %v4254_v3, %v4254_v3  ;;  %v1221_v28 = vsel %vm172_vm0, %v4254_v3, 0.0  ;;  %v770_v40 = vsub.f32 %v4178_v60, %v706_v26 }
 0x143   :  { %v1222_v62 = vrot.slane %v1221_v28, 4  ;;  %v483_v55 = vmax.f32 %v481_v43, %v482_v17  ;;  %v489_v63 = vrot.slane %v488_v44, 4  ;;  %vm4273_vm7 = vcmp.eq.s32.totalorder %v1738_v23, %v3182_v25 }
 0x144   :  { %v1220_v52 = vadd.f32 %v1219_v34, %v1218_v31  ;;  %v1228_v59 = vsel %vm172_vm0, %v897_v9, 0.0  ;;  %v823_v6 = vmul.f32 1.442695, %v770_v40  ;;  %vm4280_vm8 = vcmp.eq.s32.totalorder %v1742_v11, %v3182_v25 }
 0x145   :  { %v3011_v53 = vpop.eup %3010  ;;  %v1223_v2 = vadd.f32 %v1222_v62, %v1221_v28  ;;  %v1229_v14 = vrot.slane %v1228_v59, 4  ;;  %v484_v60 = vrot.slane %v483_v55, 2  ;;  %v490_v8 = vmax.f32 %v488_v44, %v489_v63 }
 0x146   :  { %v1554_v32 = vmul.f32 %v3011_v53, %v4160_v51  ;;  %v1472_v30 = vcombine.low %v1213_v57, %v1220_v52  ;;  %3012 = vpow2.f32 %v823_v6  ;;  %v4288_v29 = vsel %vm4273_vm7, 1.0, %v3135_v22 }
 0x147   :  { %v1224_v0 = vrot.slane %v1223_v2, 2  ;;  %v1230_v49 = vadd.f32 %v1229_v14, %v1228_v59  ;;  %v485_v42 = vmax.f32 %v483_v55, %v484_v60  ;;  %v491_v15 = vrot.slane %v490_v8, 2 }
 0x148   :  { %v2089_v18 = vcombine.high %v1554_v32, %v1554_v32  ;;  %v2171_v5 = vsub.f32 %v4235_v41, %v1554_v32  ;;  %3014 = vrcp.f32 %v1472_v30  ;;  %v2870_v36 = vsel %vm4280_vm8, 1.0, %v3135_v22 }
 0x149   :  { %v1225_v51 = vadd.f32 %v1224_v0, %v1223_v2  ;;  %v1231_v21 = vrot.slane %v1230_v49, 2  ;;  %v486_v7 = vrot.slane %v485_v42, 1  ;;  %v492_v58 = vmax.f32 %v490_v8, %v491_v15 }
 0x14a   :  { %v2172_v19 = vsub.f32 %v2868_v33, %v2089_v18  ;;  %v2235_v20 = vand.u32 2147483647, %v2171_v5  ;;  %v2426_v41 = vrot.slane %v4118_v61, %v3224_v1  ;;  %v2430_v33 = vrot.slane %v4118_v61, %v3240_v16 }
 0x14b   :  { %v1226_v24 = vrot.slane %v1225_v51, 1  ;;  %v1232_v23 = vadd.f32 %v1231_v21, %v1230_v49  ;;  %v487_v43 = vmax.f32 %v485_v42, %v486_v7  ;;  %v493_v27 = vrot.slane %v492_v58, 1 }
 0x14c   :  { %v2236_v31 = vand.u32 2147483647, %v2172_v19  ;;  %v2627_v26 = vsel %vm4256_vm5, %v2235_v20, 0.0  ;;  %v131_v17 = vcombine.high %v4290_v46, %v4290_v46  ;;  %v495_v34 = vsel %vm172_vm0, %v4290_v46, -inf }
 0x14d   :  { %v1227_v57 = vadd.f32 %v1226_v24, %v1225_v51  ;;  %v1233_v11 = vrot.slane %v1232_v23, 1  ;;  %v494_v44 = vmax.f32 %v492_v58, %v493_v27  ;;  %v1746_v28 = vrot.slane %v4297_v45, %v3190_v38 }
 0x14e   :  { %v2628_v9 = vsel %vm4268_vm6, %v2236_v31, 0.0  ;;  %v496_v35 = vrot.slane %v495_v34, 4  ;;  %v502_v40 = vsel %vm172_vm0, %v131_v17, -inf  ;;  %vm4314_vm9 = vcmp.eq.s32.totalorder %v2426_v41, 1 }
 0x14f   :  { %v2737_v62 = vcombine.low %v2627_v26, %v2628_v9  ;;  %v1234_v61 = vadd.f32 %v1233_v11, %v1232_v23  ;;  %v707_v55 = vcombine.low %v487_v43, %v494_v44  ;;  %v503_v63 = vrot.slane %v502_v40, 4  ;;  %v4344_v43 = vld [vmem:[#allocation2 + $0xc0] sm:$0xff] }
 0x150   :  { %v4312_v52 = vpop.eup %3012  ;;  %v1750_v12 = vrot.slane %v4297_v45, %v3193_v39  ;;  %vm2036_vm10 = vcmp.ge.s32.totalorder %v4297_v45, 0  ;;  %v497_v59 = vmax.f32 %v495_v34, %v496_v35  ;;  %vm4327_vm11 = vcmp.eq.s32.totalorder %v1746_v28, %v3182_v25 }
 0x151   :  { %2801 = vst [vmem:[#allocation7 + $0x90] sm:$0xff] %v2737_v62  ;;  %v1473_v6 = vcombine.low %v1227_v57, %v1234_v61  ;;  %v898_v53 = vcombine.high %v4312_v52, %v4312_v52  ;;  %v1235_v2 = vsel %vm172_vm0, %v4312_v52, 0.0  ;;  %v771_v14 = vsub.f32 %v4237_v37, %v707_v55 }
 0x152   :  { %v3015_v60 = vpop.eup %3014  ;;  %v1236_v32 = vrot.slane %v1235_v2, 4  ;;  %v498_v30 = vrot.slane %v497_v59, 2  ;;  %v504_v10 = vmax.f32 %v502_v40, %v503_v63  ;;  %v4337_v7 = vsel %vm2036_vm10, 1, %v3134_v13 }
 0x153   :  { %v1556_v0 = vmul.f32 %v3015_v60, %v4212_v56  ;;  %3016 = vrcp.f32 %v1473_v6  ;;  %v1242_v49 = vsel %vm172_vm0, %v898_v53, 0.0  ;;  %v825_v42 = vmul.f32 1.442695, %v771_v14 }
 0x154   :  { %v1237_v15 = vadd.f32 %v1236_v32, %v1235_v2  ;;  %v1243_v18 = vrot.slane %v1242_v49, 4  ;;  %v499_v5 = vmax.f32 %v497_v59, %v498_v30  ;;  %v505_v51 = vrot.slane %v504_v10, 2 }
 0x155   :  { %v2090_v37 = vcombine.high %v1556_v0, %v1556_v0  ;;  %v2173_v21 = vsub.f32 %v4288_v29, %v1556_v0  ;;  %3018 = vpow2.f32 %v825_v42  ;;  %vm2566_vm12 = vcmp.eq.s32.totalorder %v2430_v33, 1 }
 0x156   :  { %v1238_v58 = vrot.slane %v1237_v15, 2  ;;  %v1244_v19 = vadd.f32 %v1243_v18, %v1242_v49  ;;  %v500_v56 = vrot.slane %v499_v5, 1  ;;  %v506_v20 = vmax.f32 %v504_v10, %v505_v51 }
 0x157   :  { %v2174_v41 = vsub.f32 %v2870_v36, %v2090_v37  ;;  %v2237_v24 = vand.u32 2147483647, %v2173_v21  ;;  %vm4340_vm13 = vcmp.eq.s32.totalorder %v1750_v12, %v3182_v25  ;;  %v2871_v36 = vsel %vm4327_vm11, 1.0, %v3135_v22 }
 0x158   :  { %v1239_v29 = vadd.f32 %v1238_v58, %v1237_v15  ;;  %v1245_v27 = vrot.slane %v1244_v19, 2  ;;  %v501_v31 = vmax.f32 %v499_v5, %v500_v56  ;;  %v507_v26 = vrot.slane %v506_v20, 1 }
 0x159   :  { %v2238_v17 = vand.u32 2147483647, %v2174_v41  ;;  %v2629_v57 = vsel %vm4314_vm9, %v2237_v24, 0.0  ;;  %v2434_v33 = vrot.slane %v4337_v7, %v3190_v38  ;;  %v132_v9 = vcombine.high %v4344_v43, %v4344_v43 }
 0x15a   :  { %v1240_v11 = vrot.slane %v1239_v29, 1  ;;  %v1246_v44 = vadd.f32 %v1245_v27, %v1244_v19  ;;  %v508_v34 = vmax.f32 %v506_v20, %v507_v26  ;;  %v2438_v35 = vrot.slane %v4337_v7, %v3193_v39  ;;  %v4388_v20 = vld [vmem:[#allocation2 + $0xc8] sm:$0xff] }
 0x15b   :  { %v2630_v28 = vsel %vm2566_vm12, %v2238_v17, 0.0  ;;  %v1754_v40 = vrot.slane %v4297_v45, %v3200_v47  ;;  %v509_v62 = vsel %vm172_vm0, %v4344_v43, -inf  ;;  %v2872_v59 = vsel %vm4340_vm13, 1.0, %v3135_v22 }
 0x15c   :  { %v2738_v61 = vcombine.low %v2629_v57, %v2630_v28  ;;  %v1241_v55 = vadd.f32 %v1240_v11, %v1239_v29  ;;  %v1247_v63 = vrot.slane %v1246_v44, 1  ;;  %v708_v4 = vcombine.low %v501_v31, %v508_v34 }
 0x15d   :  { %v3017_v12 = vpop.eup %3016  ;;  %vm4364_vm14 = vcmp.eq.s32.totalorder %v2434_v33, 1  ;;  %v510_v53 = vrot.slane %v509_v62, 4  ;;  %v516_v2 = vsel %vm172_vm0, %v132_v9, -inf  ;;  %vm4373_vm15 = vcmp.eq.s32.totalorder %v2438_v35, 1 }
 0x15e   :  { %2802 = vst [vmem:[#allocation7 + $0x98] sm:$0xff] %v2738_v61  ;;  %v1558_v14 = vmul.f32 %v3017_v12, %v4254_v3  ;;  %v1248_v60 = vadd.f32 %v1247_v63, %v1246_v44  ;;  %v772_v8 = vsub.f32 %v4290_v46, %v708_v4  ;;  %v517_v32 = vrot.slane %v516_v2, 4 }
 0x15f   :  { %v4371_v30 = vpop.eup %3018  ;;  %v1758_v0 = vrot.slane %v4297_v45, %v3203_v48  ;;  %vm4380_vm1 = vcmp.eq.s32.totalorder %v1754_v40, %v3182_v25  ;;  %v511_v42 = vmax.f32 %v509_v62, %v510_v53  ;;  %v2442_v17 = vrot.slane %v4337_v7, %v3200_v47 }
 0x160   :  { %v2091_v3 = vcombine.high %v1558_v14, %v1558_v14  ;;  %v2175_v15 = vsub.f32 %v2871_v36, %v1558_v14  ;;  %v1474_v18 = vcombine.low %v1241_v55, %v1248_v60  ;;  %v899_v46 = vcombine.high %v4371_v30, %v4371_v30 }
 0x161   :  { %v1249_v5 = vsel %vm172_vm0, %v4371_v30, 0.0  ;;  %v827_v51 = vmul.f32 1.442695, %v772_v8  ;;  %v512_v37 = vrot.slane %v511_v42, 2  ;;  %v518_v21 = vmax.f32 %v516_v2, %v517_v32 }
 0x162   :  { %v2176_v58 = vsub.f32 %v2872_v59, %v2091_v3  ;;  %v2239_v19 = vand.u32 2147483647, %v2175_v15  ;;  %3020 = vrcp.f32 %v1474_v18  ;;  %v1250_v56 = vrot.slane %v1249_v5, 4 }
 0x163   :  { %v1256_v41 = vsel %vm172_vm0, %v899_v46, 0.0  ;;  %3022 = vpow2.f32 %v827_v51  ;;  %v513_v24 = vmax.f32 %v511_v42, %v512_v37  ;;  %v519_v23 = vrot.slane %v518_v21, 2 }
 0x164   :  { %v2240_v29 = vand.u32 2147483647, %v2176_v58  ;;  %v2631_v27 = vsel %vm4364_vm14, %v2239_v19, 0.0  ;;  %v1251_v31 = vadd.f32 %v1250_v56, %v1249_v5  ;;  %v1257_v26 = vrot.slane %v1256_v41, 4 }
 0x165   :  { %v514_v57 = vrot.slane %v513_v24, 1  ;;  %v520_v36 = vmax.f32 %v518_v21, %v519_v23  ;;  %v133_v33 = vcombine.high %v4388_v20, %v4388_v20  ;;  %vm4400_vm2 = vcmp.eq.s32.totalorder %v1758_v0, %v3182_v25 }
 0x166   :  { %v2632_v11 = vsel %vm4373_vm15, %v2240_v29, 0.0  ;;  %v1252_v34 = vrot.slane %v1251_v31, 2  ;;  %v1258_v9 = vadd.f32 %v1257_v26, %v1256_v41  ;;  %v2446_v35 = vrot.slane %v4337_v7, %v3203_v48 }
 0x167   :  { %v2739_v28 = vcombine.low %v2631_v27, %v2632_v11  ;;  %v515_v40 = vmax.f32 %v513_v24, %v514_v57  ;;  %v521_v62 = vrot.slane %v520_v36, 1  ;;  %v2873_v61 = vsel %vm4380_vm1, 1.0, %v3135_v22 }
 0x168   :  { %v1253_v55 = vadd.f32 %v1252_v34, %v1251_v31  ;;  %v1259_v63 = vrot.slane %v1258_v9, 2  ;;  %v523_v4 = vsel %vm172_vm0, %v4388_v20, -inf  ;;  %v1762_v12 = vrot.slane %v4297_v45, %v3206_v50 }
 0x169   :  { %2803 = vst [vmem:[#allocation7 + $0xa0] sm:$0xff] %v2739_v28  ;;  %v522_v59 = vmax.f32 %v520_v36, %v521_v62  ;;  %v524_v6 = vrot.slane %v523_v4, 4  ;;  %v530_v53 = vsel %vm172_vm0, %v133_v33, -inf  ;;  %v2874_v2 = vsel %vm4400_vm2, 1.0, %v3135_v22 }
 0x16a   :  { %v1254_v14 = vrot.slane %v1253_v55, 1  ;;  %v1260_v60 = vadd.f32 %v1259_v63, %v1258_v9  ;;  %v531_v8 = vrot.slane %v530_v53, 4  ;;  %vm4417_vm3 = vcmp.eq.s32.totalorder %v2442_v17, 1 }
 0x16b   :  { %vm4421_vm4 = vcmp.eq.s32.totalorder %v2446_v35, 1  ;;  %v709_v0 = vcombine.low %v515_v40, %v522_v59  ;;  %v525_v49 = vmax.f32 %v523_v4, %v524_v6  ;;  %v1766_v18 = vrot.slane %v4297_v45, %v3209_v54 }
 0x16c   :  { %v3021_v42 = vpop.eup %3020  ;;  %v1255_v3 = vadd.f32 %v1254_v14, %v1253_v55  ;;  %v1261_v15 = vrot.slane %v1260_v60, 1  ;;  %v532_v46 = vmax.f32 %v530_v53, %v531_v8  ;;  %vm4431_vm5 = vcmp.eq.s32.totalorder %v1762_v12, %v3182_v25 }
 0x16d   :  { %v4427_v5 = vpop.eup %3022  ;;  %v1560_v51 = vmul.f32 %v3021_v42, %v4312_v52  ;;  %v773_v21 = vsub.f32 %v4344_v43, %v709_v0  ;;  %v526_v58 = vrot.slane %v525_v49, 2  ;;  %vm4442_vm6 = vcmp.eq.s32.totalorder %v1766_v18, %v3182_v25 }
 0x16e   :  { %v1262_v19 = vadd.f32 %v1261_v15, %v1260_v60  ;;  %v900_v56 = vcombine.high %v4427_v5, %v4427_v5  ;;  %v1263_v41 = vsel %vm172_vm0, %v4427_v5, 0.0  ;;  %v533_v24 = vrot.slane %v532_v46, 2 }
 0x16f   :  { %v2092_v23 = vcombine.high %v1560_v51, %v1560_v51  ;;  %v2177_v29 = vsub.f32 %v2873_v61, %v1560_v51  ;;  %v1264_v27 = vrot.slane %v1263_v41, 4  ;;  %v829_v52 = vmul.f32 1.442695, %v773_v21  ;;  %v4448_v61 = vld [vmem:[#allocation2 + $0xd0] sm:$0xff] }
 0x170   :  { %v1475_v31 = vcombine.low %v1255_v3, %v1262_v19  ;;  %v1270_v26 = vsel %vm172_vm0, %v900_v56, 0.0  ;;  %v527_v17 = vmax.f32 %v525_v49, %v526_v58  ;;  %v534_v57 = vmax.f32 %v532_v46, %v533_v24  ;;  %v4482_v24 = vld [vmem:[#allocation2 + $0xd8] sm:$0xff] }
 0x171   :  { %v2178_v36 = vsub.f32 %v2874_v2, %v2092_v23  ;;  %v2241_v43 = vand.u32 2147483647, %v2177_v29  ;;  %v1265_v33 = vadd.f32 %v1264_v27, %v1263_v41  ;;  %v1271_v11 = vrot.slane %v1270_v26, 4 }
 0x172   :  { %3024 = vrcp.f32 %v1475_v31  ;;  %v528_v34 = vrot.slane %v527_v17, 1  ;;  %v535_v9 = vrot.slane %v534_v57, 1  ;;  %v2450_v55 = vrot.slane %v4337_v7, %v3206_v50 }
 0x173   :  { %v2242_v28 = vand.u32 2147483647, %v2178_v36  ;;  %v2633_v35 = vsel %vm4417_vm3, %v2241_v43, 0.0  ;;  %v1266_v40 = vrot.slane %v1265_v33, 2  ;;  %v1272_v62 = vadd.f32 %v1271_v11, %v1270_v26 }
 0x174   :  { %3026 = vpow2.f32 %v829_v52  ;;  %v529_v63 = vmax.f32 %v527_v17, %v528_v34  ;;  %v536_v4 = vmax.f32 %v534_v57, %v535_v9  ;;  %v1770_v53 = vrot.slane %v4297_v45, %v3224_v1 }
 0x175   :  { %v2634_v12 = vsel %vm4421_vm4, %v2242_v28, 0.0  ;;  %v1267_v59 = vadd.f32 %v1266_v40, %v1265_v33  ;;  %v1273_v6 = vrot.slane %v1272_v62, 2  ;;  %v1774_v14 = vrot.slane %v4297_v45, %v3240_v16 }
 0x176   :  { %v2740_v2 = vcombine.low %v2633_v35, %v2634_v12  ;;  %v710_v60 = vcombine.low %v529_v63, %v536_v4  ;;  %v134_v8 = vcombine.high %v4448_v61, %v4448_v61  ;;  %v2454_v32 = vrot.slane %v4337_v7, %v3209_v54 }
 0x177   :  { %v1268_v0 = vrot.slane %v1267_v59, 1  ;;  %v1274_v49 = vadd.f32 %v1273_v6, %v1272_v62  ;;  %v537_v10 = vsel %vm172_vm0, %v4448_v61, -inf  ;;  %v2875_v42 = vsel %vm4431_vm5, 1.0, %v3135_v22 }
 0x178   :  { %2804 = vst [vmem:[#allocation7 + $0xa8] sm:$0xff] %v2740_v2  ;;  %v774_v3 = vsub.f32 %v4388_v20, %v710_v60  ;;  %v538_v45 = vrot.slane %v537_v10, 4  ;;  %v544_v15 = vsel %vm172_vm0, %v134_v8, -inf  ;;  %vm1885_vm7 = vcmp.eq.s32.totalorder %v1770_v53, %v3182_v25 }
 0x179   :  { %v1269_v18 = vadd.f32 %v1268_v0, %v1267_v59  ;;  %v1275_v46 = vrot.slane %v1274_v49, 1  ;;  %v545_v51 = vrot.slane %v544_v15, 4  ;;  %v2876_v21 = vsel %vm4442_vm6, 1.0, %v3135_v22  ;;  %v4506_v59 = vld [vmem:[#allocation5 + $0x30] sm:$0xff] }
 0x17a   :  { %vm1886_vm8 = vcmp.eq.s32.totalorder %v1774_v14, %v3182_v25  ;;  %v831_v58 = vmul.f32 1.442695, %v774_v3  ;;  %v539_v19 = vmax.f32 %v537_v10, %v538_v45  ;;  %vm4474_vm9 = vcmp.eq.s32.totalorder %v2450_v55, 1 }
 0x17b   :  { %vm4478_vm10 = vcmp.eq.s32.totalorder %v2454_v32, 1  ;;  %v1276_v56 = vadd.f32 %v1275_v46, %v1274_v49  ;;  %v546_v41 = vmax.f32 %v544_v15, %v545_v51  ;;  %v4485_v29 = vsel %vm1885_vm7, 1.0, %v3135_v22 }
 0x17c   :  { %v3025_v23 = vpop.eup %3024  ;;  %v2458_v27 = vrot.slane %v4337_v7, %v3224_v1  ;;  %3028 = vpow2.f32 %v831_v58  ;;  %v540_v52 = vrot.slane %v539_v19, 2  ;;  %v4491_v17 = vsel %vm1886_vm8, 1.0, %v3135_v22 }
 0x17d   :  { %v1562_v31 = vmul.f32 %v3025_v23, %v4371_v30  ;;  %v1476_v26 = vcombine.low %v1269_v18, %v1276_v56  ;;  %v547_v57 = vrot.slane %v546_v41, 2  ;;  %v2462_v43 = vrot.slane %v4337_v7, %v3240_v16 }
 0x17e   :  { %v4493_v36 = vpop.eup %3026  ;;  %v541_v33 = vmax.f32 %v539_v19, %v540_v52  ;;  %v135_v11 = vcombine.high %v4482_v24, %v4482_v24  ;;  %v551_v44 = vsel %vm172_vm0, %v4482_v24, -inf  ;;  %vm4513_vm11 = vcmp.eq.s32.totalorder %v2458_v27, 1 }
 0x17f   :  { %v2093_v34 = vcombine.high %v1562_v31, %v1562_v31  ;;  %v2179_v9 = vsub.f32 %v2875_v42, %v1562_v31  ;;  %3030 = vrcp.f32 %v1476_v26  ;;  %v901_v30 = vcombine.high %v4493_v36, %v4493_v36 }
 0x180   :  { %v1277_v28 = vsel %vm172_vm0, %v4493_v36, 0.0  ;;  %v542_v35 = vrot.slane %v541_v33, 1  ;;  %v548_v40 = vmax.f32 %v546_v41, %v547_v57  ;;  %v552_v62 = vrot.slane %v551_v44, 4 }
 0x181   :  { %v2180_v55 = vsub.f32 %v2876_v21, %v2093_v34  ;;  %v2243_v63 = vand.u32 2147483647, %v2179_v9  ;;  %v1278_v4 = vrot.slane %v1277_v28, 4  ;;  %v1284_v12 = vsel %vm172_vm0, %v901_v30, 0.0 }
 0x182   :  { %v1285_v6 = vrot.slane %v1284_v12, 4  ;;  %v543_v53 = vmax.f32 %v541_v33, %v542_v35  ;;  %v549_v2 = vrot.slane %v548_v40, 1  ;;  %v553_v14 = vmax.f32 %v551_v44, %v552_v62 }
 0x183   :  { %v2244_v60 = vand.u32 2147483647, %v2180_v55  ;;  %v2635_v8 = vsel %vm4474_vm9, %v2243_v63, 0.0  ;;  %v1279_v32 = vadd.f32 %v1278_v4, %v1277_v28  ;;  %v558_v0 = vsel %vm172_vm0, %v135_v11, -inf }
 0x184   :  { %v1286_v49 = vadd.f32 %v1285_v6, %v1284_v12  ;;  %v550_v10 = vmax.f32 %v548_v40, %v549_v2  ;;  %v554_v42 = vrot.slane %v553_v14, 2  ;;  %v559_v3 = vrot.slane %v558_v0, 4 }
 0x185   :  { %v2636_v45 = vsel %vm4478_vm10, %v2244_v60, 0.0  ;;  %v1280_v18 = vrot.slane %v1279_v32, 2  ;;  %v1778_v46 = vrot.slane %v4506_v59, %v3190_v38  ;;  %v1782_v52 = vrot.slane %v4506_v59, %v3193_v39 }
 0x186   :  { %v4519_v51 = vpop.eup %3028  ;;  %v2741_v21 = vcombine.low %v2635_v8, %v2636_v45  ;;  %v1287_v58 = vrot.slane %v1286_v49, 2  ;;  %v711_v19 = vcombine.low %v543_v53, %v550_v10  ;;  %v555_v37 = vmax.f32 %v553_v14, %v554_v42 }
 0x187   :  { %v1281_v56 = vadd.f32 %v1280_v18, %v1279_v32  ;;  %v902_v41 = vcombine.high %v4519_v51, %v4519_v51  ;;  %v1291_v20 = vsel %vm172_vm0, %v4519_v51, 0.0  ;;  %v560_v23 = vmax.f32 %v558_v0, %v559_v3 }
 0x188   :  { %2805 = vst [vmem:[#allocation7 + $0xb0] sm:$0xff] %v2741_v21  ;;  %v1288_v27 = vadd.f32 %v1287_v58, %v1286_v49  ;;  %v1292_v31 = vrot.slane %v1291_v20, 4  ;;  %v775_v26 = vsub.f32 %v4448_v61, %v711_v19  ;;  %v556_v44 = vrot.slane %v555_v37, 1  ;;  %v4541_v49 = vld [vmem:[#allocation2 + $0xe0] sm:$0xff] }
 0x189   :  { %v3031_v57 = vpop.eup %3030  ;;  %v1282_v33 = vrot.slane %v1281_v56, 1  ;;  %v1298_v11 = vsel %vm172_vm0, %v902_v41, 0.0  ;;  %v561_v34 = vrot.slane %v560_v23, 2  ;;  %vm2037_vm12 = vcmp.ge.s32.totalorder %v4506_v59, 0 }
 0x18a   :  { %v1564_v9 = vmul.f32 %v3031_v57, %v4427_v5  ;;  %v1289_v30 = vrot.slane %v1288_v27, 1  ;;  %v1293_v28 = vadd.f32 %v1292_v31, %v1291_v20  ;;  %v1299_v35 = vrot.slane %v1298_v11, 4 }
 0x18b   :  { %v1283_v40 = vadd.f32 %v1282_v33, %v1281_v56  ;;  %v833_v62 = vmul.f32 1.442695, %v775_v26  ;;  %v562_v55 = vmax.f32 %v560_v23, %v561_v34  ;;  %v557_v53 = vmax.f32 %v555_v37, %v556_v44 }
 0x18c   :  { %v2094_v63 = vcombine.high %v1564_v9, %v1564_v9  ;;  %v2181_v4 = vsub.f32 %v4485_v29, %v1564_v9  ;;  %v1290_v61 = vadd.f32 %v1289_v30, %v1288_v27  ;;  %v1294_v12 = vrot.slane %v1293_v28, 2 }
 0x18d   :  { %v1300_v6 = vadd.f32 %v1299_v35, %v1298_v11  ;;  %3032 = vpow2.f32 %v833_v62  ;;  %v563_v2 = vrot.slane %v562_v55, 1  ;;  %vm2574_vm13 = vcmp.eq.s32.totalorder %v2462_v43, 1 }
 0x18e   :  { %v2182_v14 = vsub.f32 %v4491_v17, %v2094_v63  ;;  %v2245_v5 = vand.u32 2147483647, %v2181_v4  ;;  %v1477_v60 = vcombine.low %v1283_v40, %v1290_v61  ;;  %v1295_v8 = vadd.f32 %v1294_v12, %v1293_v28  ;;  %v4596_v12 = vld [vmem:[#allocation2 + $0xe8] sm:$0xff] }
 0x18f   :  { %v4539_v32 = vsel %vm2037_vm12, 1, %v3134_v13  ;;  %v1301_v29 = vrot.slane %v1300_v6, 2  ;;  %v564_v0 = vmax.f32 %v562_v55, %v563_v2  ;;  %vm4546_vm14 = vcmp.eq.s32.totalorder %v1778_v46, %v3182_v25 }
 0x190   :  { %v2246_v10 = vand.u32 2147483647, %v2182_v14  ;;  %v2637_v17 = vsel %vm4513_vm11, %v2245_v5, 0.0  ;;  %3034 = vrcp.f32 %v1477_v60  ;;  %v1296_v42 = vrot.slane %v1295_v8, 1 }
 0x191   :  { %vm4551_vm15 = vcmp.eq.s32.totalorder %v1782_v52, %v3182_v25  ;;  %v1302_v43 = vadd.f32 %v1301_v29, %v1300_v6  ;;  %v712_v45 = vcombine.low %v557_v53, %v564_v0  ;;  %v2466_v21 = vrot.slane %v4539_v32, %v3190_v38 }
 0x192   :  { %v2638_v18 = vsel %vm2574_vm13, %v2246_v10, 0.0  ;;  %v136_v15 = vcombine.high %v4541_v49, %v4541_v49  ;;  %v565_v46 = vsel %vm172_vm0, %v4541_v49, -inf  ;;  %v1297_v19 = vadd.f32 %v1296_v42, %v1295_v8 }
 0x193   :  { %v2742_v58 = vcombine.low %v2637_v17, %v2638_v18  ;;  %v1303_v37 = vrot.slane %v1302_v43, 1  ;;  %v776_v56 = vsub.f32 %v4482_v24, %v712_v45  ;;  %v2470_v41 = vrot.slane %v4539_v32, %v3193_v39 }
 0x194   :  { %v566_v20 = vrot.slane %v565_v46, 4  ;;  %v572_v23 = vsel %vm172_vm0, %v136_v15, -inf  ;;  %v1786_v52 = vrot.slane %v4506_v59, %v3200_v47  ;;  %v2879_v57 = vsel %vm4546_vm14, 1.0, %v3135_v22 }
 0x195   :  { %2806 = vst [vmem:[#allocation7 + $0xb8] sm:$0xff] %v2742_v58  ;;  %v1304_v27 = vadd.f32 %v1303_v37, %v1302_v43  ;;  %v835_v31 = vmul.f32 1.442695, %v776_v56  ;;  %v573_v26 = vrot.slane %v572_v23, 4  ;;  %v2880_v24 = vsel %vm4551_vm15, 1.0, %v3135_v22 }
 0x196   :  { %v1790_v33 = vrot.slane %v4506_v59, %v3203_v48  ;;  %v567_v11 = vmax.f32 %v565_v46, %v566_v20  ;;  %vm4577_vm1 = vcmp.eq.s32.totalorder %v2466_v21, 1  ;;  %vm4581_vm2 = vcmp.eq.s32.totalorder %v2470_v41, 1 }
 0x197   :  { %v4575_v44 = vpop.eup %3032  ;;  %v1478_v9 = vcombine.low %v1297_v19, %v1304_v27  ;;  %3036 = vpow2.f32 %v835_v31  ;;  %v574_v30 = vmax.f32 %v572_v23, %v573_v26  ;;  %v2474_v35 = vrot.slane %v4539_v32, %v3200_v47 }
 0x198   :  { %v903_v40 = vcombine.high %v4575_v44, %v4575_v44  ;;  %v1305_v62 = vsel %vm172_vm0, %v4575_v44, 0.0  ;;  %v568_v55 = vrot.slane %v567_v11, 2  ;;  %vm4592_vm3 = vcmp.eq.s32.totalorder %v1786_v52, %v3182_v25 }
 0x199   :  { %3038 = vrcp.f32 %v1478_v9  ;;  %v1306_v4 = vrot.slane %v1305_v62, 4  ;;  %v575_v61 = vrot.slane %v574_v30, 2  ;;  %vm4599_vm4 = vcmp.eq.s32.totalorder %v1790_v33, %v3182_v25 }
 0x19a   :  { %v3035_v6 = vpop.eup %3034  ;;  %v1312_v2 = vsel %vm172_vm0, %v903_v40, 0.0  ;;  %v569_v14 = vmax.f32 %v567_v11, %v568_v55  ;;  %v579_v5 = vsel %vm172_vm0, %v4596_v12, -inf  ;;  %v2478_v10 = vrot.slane %v4539_v32, %v3203_v48 }
 0x19b   :  { %v1566_v60 = vmul.f32 %v3035_v6, %v4493_v36  ;;  %v1307_v8 = vadd.f32 %v1306_v4, %v1305_v62  ;;  %v1313_v29 = vrot.slane %v1312_v2, 4  ;;  %v576_v0 = vmax.f32 %v574_v30, %v575_v61 }
 0x19c   :  { %v570_v17 = vrot.slane %v569_v14, 1  ;;  %v137_v42 = vcombine.high %v4596_v12, %v4596_v12  ;;  %v580_v3 = vrot.slane %v579_v5, 4  ;;  %v2881_v21 = vsel %vm4592_vm3, 1.0, %v3135_v22 }
 0x19d   :  { %v2095_v7 = vcombine.high %v1566_v60, %v1566_v60  ;;  %v2183_v43 = vsub.f32 %v2879_v57, %v1566_v60  ;;  %v1308_v45 = vrot.slane %v1307_v8, 2  ;;  %v1314_v18 = vadd.f32 %v1313_v29, %v1312_v2 }
 0x19e   :  { %v2882_v36 = vsel %vm4599_vm4, 1.0, %v3135_v22  ;;  %v571_v15 = vmax.f32 %v569_v14, %v570_v17  ;;  %v577_v46 = vrot.slane %v576_v0, 1  ;;  %vm4617_vm5 = vcmp.eq.s32.totalorder %v2474_v35, 1 }
 0x19f   :  { %v2184_v58 = vsub.f32 %v2880_v24, %v2095_v7  ;;  %v2247_v19 = vand.u32 2147483647, %v2183_v43  ;;  %v1309_v37 = vadd.f32 %v1308_v45, %v1307_v8  ;;  %v1315_v56 = vrot.slane %v1314_v18, 2 }
 0x1a0   :  { %v578_v20 = vmax.f32 %v576_v0, %v577_v46  ;;  %v581_v23 = vmax.f32 %v579_v5, %v580_v3  ;;  %v586_v27 = vsel %vm172_vm0, %v137_v42, -inf  ;;  %vm4626_vm6 = vcmp.eq.s32.totalorder %v2478_v10, 1 }
 0x1a1   :  { %v4622_v52 = vpop.eup %3036  ;;  %v2248_v31 = vand.u32 2147483647, %v2184_v58  ;;  %v2639_v26 = vsel %vm4577_vm1, %v2247_v19, 0.0  ;;  %v1310_v24 = vrot.slane %v1309_v37, 1  ;;  %v1316_v33 = vadd.f32 %v1315_v56, %v1314_v18  ;;  %v4645_v56 = vld [vmem:[#allocation2 + $0xf0] sm:$0xff] }
 0x1a2   :  { %v904_v11 = vcombine.high %v4622_v52, %v4622_v52  ;;  %v1319_v9 = vsel %vm172_vm0, %v4622_v52, 0.0  ;;  %v713_v30 = vcombine.low %v571_v15, %v578_v20  ;;  %v582_v35 = vrot.slane %v581_v23, 2 }
 0x1a3   :  { %v3039_v40 = vpop.eup %3038  ;;  %v2640_v62 = vsel %vm4581_vm2, %v2248_v31, 0.0  ;;  %v1311_v34 = vadd.f32 %v1310_v24, %v1309_v37  ;;  %v1317_v55 = vrot.slane %v1316_v33, 1  ;;  %v1320_v63 = vrot.slane %v1319_v9, 4 }
 0x1a4   :  { %v2743_v4 = vcombine.low %v2639_v26, %v2640_v62  ;;  %v1568_v61 = vmul.f32 %v3039_v40, %v4519_v51  ;;  %v1326_v6 = vsel %vm172_vm0, %v904_v11, 0.0  ;;  %v777_v53 = vsub.f32 %v4541_v49, %v713_v30 }
 0x1a5   :  { %v1318_v2 = vadd.f32 %v1317_v55, %v1316_v33  ;;  %v1321_v14 = vadd.f32 %v1320_v63, %v1319_v9  ;;  %v1327_v5 = vrot.slane %v1326_v6, 4  ;;  %v583_v60 = vmax.f32 %v581_v23, %v582_v35 }
 0x1a6   :  { %2807 = vst [vmem:[#allocation7 + $0xc0] sm:$0xff] %v2743_v4  ;;  %v2096_v8 = vcombine.high %v1568_v61, %v1568_v61  ;;  %v2185_v29 = vsub.f32 %v2881_v21, %v1568_v61  ;;  %v837_v0 = vmul.f32 1.442695, %v777_v53  ;;  %v587_v28 = vrot.slane %v586_v27, 4 }
 0x1a7   :  { %v1479_v10 = vcombine.low %v1311_v34, %v1318_v2  ;;  %v1794_v17 = vrot.slane %v4506_v59, %v3206_v50  ;;  %v1322_v42 = vrot.slane %v1321_v14, 2  ;;  %v1328_v3 = vadd.f32 %v1327_v5, %v1326_v6 }
 0x1a8   :  { %v2186_v51 = vsub.f32 %v2882_v36, %v2096_v8  ;;  %v2249_v7 = vand.u32 2147483647, %v2185_v29  ;;  %3040 = vpow2.f32 %v837_v0  ;;  %v588_v43 = vmax.f32 %v586_v27, %v587_v28 }
 0x1a9   :  { %3042 = vrcp.f32 %v1479_v10  ;;  %v1798_v49 = vrot.slane %v4506_v59, %v3209_v54  ;;  %v1323_v45 = vadd.f32 %v1322_v42, %v1321_v14  ;;  %v1329_v18 = vrot.slane %v1328_v3, 2 }
 0x1aa   :  { %v2250_v15 = vand.u32 2147483647, %v2186_v51  ;;  %v2641_v21 = vsel %vm4617_vm5, %v2249_v7, 0.0  ;;  %v584_v46 = vrot.slane %v583_v60, 1  ;;  %v589_v58 = vrot.slane %v588_v43, 2 }
 0x1ab   :  { %v1324_v19 = vrot.slane %v1323_v45, 1  ;;  %v1330_v37 = vadd.f32 %v1329_v18, %v1328_v3  ;;  %vm1891_vm7 = vcmp.eq.s32.totalorder %v1794_v17, %v3182_v25  ;;  %vm1892_vm8 = vcmp.eq.s32.totalorder %v1798_v49, %v3182_v25 }
 0x1ac   :  { %v2642_v36 = vsel %vm4626_vm6, %v2250_v15, 0.0  ;;  %v590_v20 = vmax.f32 %v588_v43, %v589_v58  ;;  %v2482_v41 = vrot.slane %v4539_v32, %v3206_v50  ;;  %v585_v26 = vmax.f32 %v583_v60, %v584_v46 }
 0x1ad   :  { %v2744_v23 = vcombine.low %v2641_v21, %v2642_v36  ;;  %v1325_v27 = vadd.f32 %v1324_v19, %v1323_v45  ;;  %v1331_v31 = vrot.slane %v1330_v37, 1  ;;  %v138_v33 = vcombine.high %v4645_v56, %v4645_v56 }
 0x1ae   :  { %v591_v24 = vrot.slane %v590_v20, 1  ;;  %v2883_v57 = vsel %vm1891_vm7, 1.0, %v3135_v22  ;;  %v593_v9 = vsel %vm172_vm0, %v4645_v56, -inf  ;;  %v2884_v30 = vsel %vm1892_vm8, 1.0, %v3135_v22 }
 0x1af   :  { %2808 = vst [vmem:[#allocation7 + $0xc8] sm:$0xff] %v2744_v23  ;;  %v1332_v11 = vadd.f32 %v1331_v31, %v1330_v37  ;;  %v594_v40 = vrot.slane %v593_v9, 4  ;;  %v600_v62 = vsel %vm172_vm0, %v138_v33, -inf  ;;  %v2486_v34 = vrot.slane %v4539_v32, %v3209_v54  ;;  %v4693_v37 = vld [vmem:[#allocation2 + $0xf8] sm:$0xff] }
 0x1b0   :  { %v592_v35 = vmax.f32 %v590_v20, %v591_v24  ;;  %v1802_v63 = vrot.slane %v4506_v59, %v3224_v1  ;;  %v601_v4 = vrot.slane %v600_v62, 4  ;;  %vm4666_vm9 = vcmp.eq.s32.totalorder %v2482_v41, 1 }
 0x1b1   :  { %v1480_v55 = vcombine.low %v1325_v27, %v1332_v11  ;;  %v1806_v53 = vrot.slane %v4506_v59, %v3240_v16  ;;  %v595_v14 = vmax.f32 %v593_v9, %v594_v40  ;;  %vm4678_vm10 = vcmp.eq.s32.totalorder %v2486_v34, 1 }
 0x1b2   :  { %v4664_v61 = vpop.eup %3040  ;;  %v714_v2 = vcombine.low %v585_v26, %v592_v35  ;;  %v602_v29 = vmax.f32 %v600_v62, %v601_v4  ;;  %vm4683_vm11 = vcmp.eq.s32.totalorder %v1802_v63, %v3182_v25  ;;  %v607_v11 = vsel %vm172_vm0, %v4693_v37, -inf }
 0x1b3   :  { %v3043_v5 = vpop.eup %3042  ;;  %3044 = vrcp.f32 %v1480_v55  ;;  %v905_v60 = vcombine.high %v4664_v61, %v4664_v61  ;;  %v1333_v8 = vsel %vm172_vm0, %v4664_v61, 0.0  ;;  %v596_v17 = vrot.slane %v595_v14, 2 }
 0x1b4   :  { %v1570_v0 = vmul.f32 %v3043_v5, %v4575_v44  ;;  %v1334_v28 = vrot.slane %v1333_v8, 4  ;;  %v778_v10 = vsub.f32 %v4596_v12, %v714_v2  ;;  %v603_v51 = vrot.slane %v602_v29, 2 }
 0x1b5   :  { %v1340_v3 = vsel %vm172_vm0, %v905_v60, 0.0  ;;  %vm4689_vm12 = vcmp.eq.s32.totalorder %v1806_v53, %v3182_v25  ;;  %v597_v18 = vmax.f32 %v595_v14, %v596_v17  ;;  %v2885_v36 = vsel %vm4683_vm11, 1.0, %v3135_v22 }
 0x1b6   :  { %v2097_v7 = vcombine.high %v1570_v0, %v1570_v0  ;;  %v2187_v43 = vsub.f32 %v2883_v57, %v1570_v0  ;;  %v1335_v49 = vadd.f32 %v1334_v28, %v1333_v8  ;;  %v1341_v44 = vrot.slane %v1340_v3, 4 }
 0x1b7   :  { %v839_v45 = vmul.f32 1.442695, %v778_v10  ;;  %v604_v15 = vmax.f32 %v602_v29, %v603_v51  ;;  %v598_v20 = vrot.slane %v597_v18, 1  ;;  %v139_v57 = vcombine.high %v4693_v37, %v4693_v37 }
 0x1b8   :  { %v2188_v21 = vsub.f32 %v2884_v30, %v2097_v7  ;;  %v2251_v46 = vand.u32 2147483647, %v2187_v43  ;;  %v1336_v58 = vrot.slane %v1335_v49, 2  ;;  %v1342_v19 = vadd.f32 %v1341_v44, %v1340_v3 }
 0x1b9   :  { %3046 = vpow2.f32 %v839_v45  ;;  %v605_v23 = vrot.slane %v604_v15, 1  ;;  %v599_v24 = vmax.f32 %v597_v18, %v598_v20  ;;  %v608_v40 = vrot.slane %v607_v11, 4 }
 0x1ba   :  { %v2252_v27 = vand.u32 2147483647, %v2188_v21  ;;  %v2643_v31 = vsel %vm4666_vm9, %v2251_v46, 0.0  ;;  %v1337_v41 = vadd.f32 %v1336_v58, %v1335_v49  ;;  %v1343_v26 = vrot.slane %v1342_v19, 2 }
 0x1bb   :  { %v606_v33 = vmax.f32 %v604_v15, %v605_v23  ;;  %v2490_v55 = vrot.slane %v4539_v32, %v3224_v1  ;;  %v614_v4 = vsel %vm172_vm0, %v139_v57, -inf  ;;  %v609_v14 = vmax.f32 %v607_v11, %v608_v40 }
 0x1bc   :  { %v2644_v9 = vsel %vm4678_vm10, %v2252_v27, 0.0  ;;  %v1338_v30 = vrot.slane %v1337_v41, 1  ;;  %v1344_v35 = vadd.f32 %v1343_v26, %v1342_v19  ;;  %v2886_v5 = vsel %vm4689_vm12, 1.0, %v3135_v22 }
 0x1bd   :  { %v3045_v62 = vpop.eup %3044  ;;  %v2745_v34 = vcombine.low %v2643_v31, %v2644_v9  ;;  %v715_v63 = vcombine.low %v599_v24, %v606_v33  ;;  %v2494_v60 = vrot.slane %v4539_v32, %v3240_v16  ;;  %v615_v29 = vrot.slane %v614_v4, 4  ;;  %v4722_v32 = vld [vmem:[#allocation5 + $0x38] sm:$0xff] }
 0x1be   :  { %v1572_v6 = vmul.f32 %v3045_v62, %v4622_v52  ;;  %v1339_v53 = vadd.f32 %v1338_v30, %v1337_v41  ;;  %v1345_v2 = vrot.slane %v1344_v35, 1  ;;  %v610_v17 = vrot.slane %v609_v14, 2 }
 0x1bf   :  { %2809 = vst [vmem:[#allocation7 + $0xd0] sm:$0xff] %v2745_v34  ;;  %v779_v8 = vsub.f32 %v4645_v56, %v715_v63  ;;  %vm4716_vm13 = vcmp.eq.s32.totalorder %v2490_v55, 1  ;;  %v616_v59 = vmax.f32 %v614_v4, %v615_v29  ;;  %vm2582_vm14 = vcmp.eq.s32.totalorder %v2494_v60, 1 }
 0x1c0   :  { %v2098_v0 = vcombine.high %v1572_v6, %v1572_v6  ;;  %v2189_v28 = vsub.f32 %v2885_v36, %v1572_v6  ;;  %v1346_v10 = vadd.f32 %v1345_v2, %v1344_v35  ;;  %v611_v43 = vmax.f32 %v609_v14, %v610_v17 }
 0x1c1   :  { %v841_v42 = vmul.f32 1.442695, %v779_v8  ;;  %v617_v56 = vrot.slane %v616_v59, 2  ;;  %v1810_v58 = vrot.slane %v4722_v32, %v3190_v38  ;;  %vm2038_vm15 = vcmp.ge.s32.totalorder %v4722_v32, 0 }
 0x1c2   :  { %v2190_v3 = vsub.f32 %v2886_v5, %v2098_v0  ;;  %v2253_v51 = vand.u32 2147483647, %v2189_v28  ;;  %v1481_v7 = vcombine.low %v1339_v53, %v1346_v10  ;;  %v612_v15 = vrot.slane %v611_v43, 1 }
 0x1c3   :  { %v4720_v49 = vpop.eup %3046  ;;  %3048 = vpow2.f32 %v841_v42  ;;  %v618_v21 = vmax.f32 %v616_v59, %v617_v56  ;;  %v1814_v26 = vrot.slane %v4722_v32, %v3193_v39  ;;  %vm1895_vm1 = vcmp.eq.s32.totalorder %v1810_v58, %v3182_v25 }
 0x1c4   :  { %v2254_v44 = vand.u32 2147483647, %v2190_v3  ;;  %v2645_v12 = vsel %vm4716_vm13, %v2253_v51, 0.0  ;;  %3050 = vrcp.f32 %v1481_v7  ;;  %v906_v45 = vcombine.high %v4720_v49, %v4720_v49 }
 0x1c5   :  { %v1347_v18 = vsel %vm172_vm0, %v4720_v49, 0.0  ;;  %v613_v27 = vmax.f32 %v611_v43, %v612_v15  ;;  %v619_v31 = vrot.slane %v618_v21, 1  ;;  %v4738_v11 = vsel %vm2038_vm15, 1, %v3134_v13 }
 0x1c6   :  { %v2646_v46 = vsel %vm2582_vm14, %v2254_v44, 0.0  ;;  %v1348_v19 = vrot.slane %v1347_v18, 4  ;;  %v1354_v36 = vsel %vm172_vm0, %v906_v45, 0.0  ;;  %vm1896_vm2 = vcmp.eq.s32.totalorder %v1814_v26, %v3182_v25 }
 0x1c7   :  { %v2746_v20 = vcombine.low %v2645_v12, %v2646_v46  ;;  %v1355_v23 = vrot.slane %v1354_v36, 4  ;;  %v620_v33 = vmax.f32 %v618_v21, %v619_v31  ;;  %v2887_v62 = vsel %vm1895_vm1, 1.0, %v3135_v22 }
 0x1c8   :  { %v1349_v41 = vadd.f32 %v1348_v19, %v1347_v18  ;;  %v2498_v4 = vrot.slane %v4738_v11, %v3190_v38  ;;  %v2888_v8 = vsel %vm1896_vm2, 1.0, %v3135_v22  ;;  %v1818_v15 = vrot.slane %v4722_v32, %v3200_v47 }
 0x1c9   :  { %2810 = vst [vmem:[#allocation7 + $0xd8] sm:$0xff] %v2746_v20  ;;  %v1356_v24 = vadd.f32 %v1355_v23, %v1354_v36  ;;  %v716_v30 = vcombine.low %v613_v27, %v620_v33  ;;  %v1822_v46 = vrot.slane %v4722_v32, %v3203_v48  ;;  %v2506_v33 = vrot.slane %v4738_v11, %v3200_v47 }
 0x1ca   :  { %v1350_v57 = vrot.slane %v1349_v41, 2  ;;  %vm4756_vm3 = vcmp.eq.s32.totalorder %v2498_v4, 1  ;;  %vm1897_vm5 = vcmp.eq.s32.totalorder %v1818_v15, %v3182_v25  ;;  %v1826_v47 = vrot.slane %v4722_v32, %v3206_v50 }
 0x1cb   :  { %v1357_v9 = vrot.slane %v1356_v24, 2  ;;  %v780_v55 = vsub.f32 %v4693_v37, %v716_v30  ;;  %v2502_v37 = vrot.slane %v4738_v11, %v3193_v39  ;;  %vm1898_vm6 = vcmp.eq.s32.totalorder %v1822_v46, %v3182_v25 }
 0x1cc   :  { %v1351_v35 = vadd.f32 %v1350_v57, %v1349_v41  ;;  %vm4782_vm7 = vcmp.eq.s32.totalorder %v2506_v33, 1  ;;  %vm1899_vm8 = vcmp.eq.s32.totalorder %v1826_v47, %v3182_v25  ;;  %v2514_v52 = vrot.slane %v4738_v11, %v3206_v50 }
 0x1cd   :  { %v4740_v40 = vpop.eup %3048  ;;  %v1358_v34 = vadd.f32 %v1357_v9, %v1356_v24  ;;  %v843_v60 = vmul.f32 1.442695, %v780_v55  ;;  %vm2584_vm4 = vcmp.eq.s32.totalorder %v2502_v37, 1  ;;  %v2889_v24 = vsel %vm1897_vm5, 1.0, %v3135_v22 }
 0x1ce   :  { %v3051_v63 = vpop.eup %3050  ;;  %v1352_v6 = vrot.slane %v1351_v35, 1  ;;  %v907_v13 = vcombine.high %v4740_v40, %v4740_v40  ;;  %v1361_v53 = vsel %vm172_vm0, %v4740_v40, 0.0  ;;  %vm2587_vm10 = vcmp.eq.s32.totalorder %v2514_v52, 1 }
 0x1cf   :  { %v1574_v2 = vmul.f32 %v3051_v63, %v4664_v61  ;;  %v1359_v14 = vrot.slane %v1358_v34, 1  ;;  %v1362_v5 = vrot.slane %v1361_v53, 4  ;;  %3052 = vpow2.f32 %v843_v60 }
 0x1d0   :  { %v1353_v29 = vadd.f32 %v1352_v6, %v1351_v35  ;;  %v1368_v38 = vsel %vm172_vm0, %v907_v13, 0.0  ;;  %v1834_v50 = vrot.slane %v4722_v32, %v3224_v1 }
 0x1d1   :  { %v2099_v0 = vcombine.high %v1574_v2, %v1574_v2  ;;  %v2191_v28 = vsub.f32 %v2887_v62, %v1574_v2  ;;  %v1360_v10 = vadd.f32 %v1359_v14, %v1358_v34  ;;  %v1363_v17 = vadd.f32 %v1362_v5, %v1361_v53 }
 0x1d2   :  { %v1369_v61 = vrot.slane %v1368_v38, 4  ;;  %v2890_v62 = vsel %vm1898_vm6, 1.0, %v3135_v22  ;;  %v2510_v34 = vrot.slane %v4738_v11, %v3203_v48  ;;  %v1830_v5 = vrot.slane %v4722_v32, %v3209_v54 }
 0x1d3   :  { %v2192_v42 = vsub.f32 %v2888_v8, %v2099_v0  ;;  %v2255_v59 = vand.u32 2147483647, %v2191_v28  ;;  %v1482_v3 = vcombine.low %v1353_v29, %v1360_v10  ;;  %v1364_v51 = vrot.slane %v1363_v17, 2 }
 0x1d4   :  { %v1370_v7 = vadd.f32 %v1369_v61, %v1368_v38  ;;  %vm1900_vm9 = vcmp.eq.s32.totalorder %v1830_v5, %v3182_v25  ;;  %vm1901_vm12 = vcmp.eq.s32.totalorder %v1834_v50, %v3182_v25 }
 0x1d5   :  { %v2256_v39 = vand.u32 2147483647, %v2192_v42  ;;  %v2647_v43 = vsel %vm4756_vm3, %v2255_v59, 0.0  ;;  %3054 = vrcp.f32 %v1482_v3  ;;  %v1365_v56 = vadd.f32 %v1364_v51, %v1363_v17 }
 0x1d6   :  { %v1371_v44 = vrot.slane %v1370_v7, 2  ;;  %v2891_v17 = vsel %vm1899_vm8, 1.0, %v3135_v22  ;;  %v2892_v59 = vsel %vm1900_vm9, 1.0, %v3135_v22  ;;  %v2518_v3 = vrot.slane %v4738_v11, %v3209_v54 }
 0x1d7   :  { %v2648_v12 = vsel %vm2584_vm4, %v2256_v39, 0.0  ;;  %v1366_v45 = vrot.slane %v1365_v56, 1  ;;  %v2893_v15 = vsel %vm1901_vm12, 1.0, %v3135_v22 }
 0x1d8   :  { %v2747_v18 = vcombine.low %v2647_v43, %v2648_v12  ;;  %v1372_v21 = vadd.f32 %v1371_v44, %v1370_v7  ;;  %vm2588_vm11 = vcmp.eq.s32.totalorder %v2518_v3, 1 }
 0x1d9   :  { %v1367_v58 = vadd.f32 %v1366_v45, %v1365_v56  ;;  %v4766_v36 = vpop.eup %3052 }
 0x1da   :  { %2811 = vst [vmem:[#allocation7 + $0xe0] sm:$0xff] %v2747_v18  ;;  %v1373_v19 = vrot.slane %v1372_v21, 1  ;;  %v908_v23 = vcombine.high %v4766_v36, %v4766_v36  ;;  %v1375_v27 = vsel %vm172_vm0, %v4766_v36, 0.0 }
 0x1db   :  { %v1376_v41 = vrot.slane %v1375_v27, 4 }
 0x1dc   :  { %v1374_v20 = vadd.f32 %v1373_v19, %v1372_v21  ;;  %v1382_v57 = vsel %vm172_vm0, %v908_v23, 0.0  ;;  %vm2586_vm0 = vcmp.eq.s32.totalorder %v2510_v34, 1  ;;  %v2522_v21 = vrot.slane %v4738_v11, %v3224_v1 }
 0x1dd   :  { %v1377_v30 = vadd.f32 %v1376_v41, %v1375_v27  ;;  %v1383_v35 = vrot.slane %v1382_v57, 4  ;;  %v2526_v19 = vrot.slane %v4738_v11, %v3240_v16 }
 0x1de   :  { %v1483_v31 = vcombine.low %v1367_v58, %v1374_v20  ;;  %vm2589_vm14 = vcmp.eq.s32.totalorder %v2522_v21, 1 }
 0x1df   :  { %v3055_v26 = vpop.eup %3054  ;;  %v1378_v4 = vrot.slane %v1377_v30, 2  ;;  %v1384_v6 = vadd.f32 %v1383_v35, %v1382_v57  ;;  %vm2590_vm15 = vcmp.eq.s32.totalorder %v2526_v19, 1 }
 0x1e0   :  { %v1576_v9 = vmul.f32 %v3055_v26, %v4720_v49  ;;  %3056 = vrcp.f32 %v1483_v31 }
 0x1e1   :  { %v1379_v2 = vadd.f32 %v1378_v4, %v1377_v30  ;;  %v1385_v14 = vrot.slane %v1384_v6, 2 }
 0x1e2   :  { %v2100_v55 = vcombine.high %v1576_v9, %v1576_v9  ;;  %v2193_v63 = vsub.f32 %v2889_v24, %v1576_v9 }
 0x1e3   :  { %v1380_v8 = vrot.slane %v1379_v2, 1  ;;  %v1386_v37 = vadd.f32 %v1385_v14, %v1384_v6 }
 0x1e4   :  { %v2194_v49 = vsub.f32 %v2890_v62, %v2100_v55  ;;  %v2257_v53 = vand.u32 2147483647, %v2193_v63 }
 0x1e5   :  { %v1381_v38 = vadd.f32 %v1380_v8, %v1379_v2  ;;  %v1387_v0 = vrot.slane %v1386_v37, 1 }
 0x1e6   :  { %v2258_v48 = vand.u32 2147483647, %v2194_v49  ;;  %v2649_v60 = vsel %vm4782_vm7, %v2257_v53, 0.0 }
 0x1e7   :  { %v1388_v61 = vadd.f32 %v1387_v0, %v1386_v37 }
 0x1e8   :  { %v2650_v29 = vsel %vm2586_vm0, %v2258_v48, 0.0 }
 0x1e9   :  { %v2748_v28 = vcombine.low %v2649_v60, %v2650_v29  ;;  %v1484_v51 = vcombine.low %v1381_v38, %v1388_v61 }
 0x1ea   :  { %v3057_v10 = vpop.eup %3056 }
 0x1eb   :  { %2812 = vst [vmem:[#allocation7 + $0xe8] sm:$0xff] %v2748_v28  ;;  %v1578_v42 = vmul.f32 %v3057_v10, %v4740_v40  ;;  %3058 = vrcp.f32 %v1484_v51  ;;  %v1838_v40 = vrot.slane %v4722_v32, %v3240_v16 }
 0x1ed   :  { %v2101_v7 = vcombine.high %v1578_v42, %v1578_v42  ;;  %v2195_v39 = vsub.f32 %v2891_v17, %v1578_v42  ;;  %vm1902_vm13 = vcmp.eq.s32.totalorder %v1838_v40, %v3182_v25 }
 0x1ee   :  { %v2894_v58 = vsel %vm1902_vm13, 1.0, %v3135_v22 }
 0x1ef   :  { %v2196_v43 = vsub.f32 %v2892_v59, %v2101_v7  ;;  %v2259_v56 = vand.u32 2147483647, %v2195_v39 }
 0x1f1   :  { %v2260_v44 = vand.u32 2147483647, %v2196_v43  ;;  %v2651_v12 = vsel %vm2587_vm10, %v2259_v56, 0.0 }
 0x1f3   :  { %v2652_v45 = vsel %vm2588_vm11, %v2260_v44, 0.0 }
 0x1f4   :  { %v2749_v18 = vcombine.low %v2651_v12, %v2652_v45 }
 0x1f5   :  { %v3059_v54 = vpop.eup %3058 }
 0x1f6   :  { %2813 = vst [vmem:[#allocation7 + $0xf0] sm:$0xff] %v2749_v18  ;;  %v1580_v46 = vmul.f32 %v3059_v54, %v4766_v36 }
 0x1f8   :  { %v2102_v32 = vcombine.high %v1580_v46, %v1580_v46  ;;  %v2197_v20 = vsub.f32 %v2893_v15, %v1580_v46 }
 0x1fa   :  { %v2198_v23 = vsub.f32 %v2894_v58, %v2102_v32  ;;  %v2261_v27 = vand.u32 2147483647, %v2197_v20 }
 0x1fc   :  { %v2262_v25 = vand.u32 2147483647, %v2198_v23  ;;  %v2653_v31 = vsel %vm2589_vm14, %v2261_v27, 0.0 }
 0x1fe   :  { %v2654_v41 = vsel %vm2590_vm15, %v2262_v25, 0.0 }
 0x1ff   :  { %v2750_v26 = vcombine.low %v2653_v31, %v2654_v41 }
 0x201   :  { %2814 = vst [vmem:[#allocation7 + $0xf8] sm:$0xff] %v2750_v26 }
 0x202   :  { %3115 = shalt.err (!%p3112_p6)
}
 0x203   :  { %s3116_s8 = scalar_lea.hbm %s4828_s2, 4096 }
 0x204   :  { %p3117_p7 = scmp.ne.s32.totalorder %s4828_s2, %s3116_s8  ;;  %p3120_p8 = scmp.lt.u32.totalorder %s3116_s8, %s4828_s2 }
 0x206   :  { %p3122_p9 = pnand %p3120_p8, %p3117_p7 }
 0x208   :  { %3125 = shalt.err (!%p3122_p9)
}
 0x209   :  { %2824 = dma.vmem_to_hbm [thread:$0]  %s2822_s4, 4096, %s4828_s2, [#allocation4]  }
 0x20a   :  { %3130 = dma.done.wait [#allocation4], 4096  }
 0x20b   :  { %3131 = vsyncadd [#allocation4], 4294963200 }
 0x20c   :  { %2828 = vsyncpa [#allocation3], 1 }
 0x20d   :  { %2829 = vsyncpa [#allocation6], 1 }
 0x20e   :  { %2830 = vsyncpa [#allocation4], 1 }

</bundles_post_ra>
